<compile_context>
chip_gen: v5e
topology: v5e:2x2
jax: 0.10.0
libtpu: 0.0.40
codegen_flags: <defaults>
</compile_context>

<pallas_src>
import functools

import jax
import jax.numpy as jnp
import numpy as np
from jax import lax
from jax.experimental import pallas as pl
from jax.experimental.pallas import tpu as pltpu

_SELU_ALPHA = 1.6732632423543772848170429916717
_SELU_SCALE = 1.0507009873554804934193349852946


def _selu(x):
    return _SELU_SCALE * jnp.where(x > 0, x, _SELU_ALPHA * (jnp.exp(x) - 1.0))


def _reflect_pad_w(a):
    """Reflect-pad (pad=1) the W (second) axis of an (R, W, C) value."""
    W = a.shape[1]
    return jnp.concatenate([a[:, 1:2, :], a, a[:, W - 2:W - 1, :]], axis=1)


def _conv3x3_selu(ap, w_ref):
    """3x3 'VALID' conv of a padded activation, fused into ONE K=9C MXU matmul, then SELU.

    ap:    (R+2, W+2, C) bf16 value (already padded by 1 in both spatial dims).
    w_ref: (9*C, F) bf16 ref; row index = ky*3C + kx*C + c (c fastest).
    Returns (R, W, F) f32.
    """
    Hp, Wp, C = ap.shape
    R, W = Hp - 2, Wp - 2
    # dx taps on the lane axis -> (R+2, W, 3C); dy taps appended likewise -> K = 9C.
    cols = jnp.concatenate([ap[:, dx:dx + W, :] for dx in range(3)], axis=-1)
    patch = jnp.concatenate([cols[dy:dy + R] for dy in range(3)], axis=-1)      # (R, W, 9C)
    y = jnp.dot(patch.reshape(R * W, 9 * C), w_ref[...],
                preferred_element_type=jnp.float32)                             # (R*W, F)
    return _selu(y).reshape(R, W, -1)


def _conv_block_kernel(x_ref, w1_ref, w2_ref, pooled_ref, out_ref, *, H, W, Cin, F, TH):
    s = pl.program_id(1)
    nstrips = pl.num_programs(1)
    is_first = s == 0
    is_last = s == nstrips - 1

    r0 = s * TH                                    # first output row of this strip
    i0 = jnp.clip(r0 - 2, 0, H - TH - 4)           # first input row of the loaded window

    # (TH+4)-row input window; it contains every row any boundary reflection can reference.
    xwin = x_ref[0, pl.ds(i0, TH + 4), :, :]       # (TH+4, W, Cin) bf16

    # Row-reflected conv1 input: xpad[t] == input row reflect(r0-2+t).
    # Middle strips: identity.  First/last strips: fix the two virtual rows via selects.
    xpad_first = jnp.concatenate([xwin[2:3], xwin[1:2], xwin[:TH + 2]], axis=0)
    xpad_last = jnp.concatenate([xwin[2:], xwin[TH + 2:TH + 3], xwin[TH + 1:TH + 2]], axis=0)
    xpad = jnp.where(is_first, xpad_first, jnp.where(is_last, xpad_last, xwin))

    # conv1 + SELU over TH+2 rows (= conv1 output rows r0-1 .. r0+TH; the out-of-image
    # first/last row of that range is a dummy value that the next select discards).
    y1 = _conv3x3_selu(_reflect_pad_w(xpad), w1_ref)               # (TH+2, W, F) f32
    y1 = y1.astype(jnp.bfloat16)                                   # bf16 MXU operand for conv2

    # conv2's padding reflects the conv1 OUTPUT at the image boundary:
    # y1pad[i] == conv1 output row reflect(r0-1+i).
    y1pad_first = jnp.concatenate([y1[2:3], y1[1:]], axis=0)
    y1pad_last = jnp.concatenate([y1[:TH + 1], y1[TH - 1:TH]], axis=0)
    y1pad = jnp.where(is_first, y1pad_first, jnp.where(is_last, y1pad_last, y1))

    # conv2 + SELU -> the TH output rows of this strip.
    y2 = _conv3x3_selu(_reflect_pad_w(y1pad), w2_ref)              # (TH, W, F) f32
    out_ref[0] = y2.astype(out_ref.dtype)

    # 2x2 stride-2 max pool from values: one major-axis split + one W split, two maxima.
    y2r = y2.reshape(TH // 2, 2, W, F)
    rmax = jnp.maximum(y2r[:, 0], y2r[:, 1])                       # (TH//2, W, F)
    cr = rmax.reshape(TH // 2, W // 2, 2, F)
    pooled_ref[0] = jnp.maximum(cr[:, :, 0, :], cr[:, :, 1, :]).astype(pooled_ref.dtype)


def _pick_strip_rows(H, target):
    """Largest even divisor TH of H with TH <= target and TH + 4 <= H (>= 2 strips)."""
    best = 0
    for th in range(2, H - 3, 2):
        if H % th == 0 and th <= target:
            best = max(best, th)
    if best == 0:
        raise ValueError(f"H={H} too small for strip tiling (need even divisor TH with TH+4<=H)")
    return best


def _vmem_limit_bytes(H, W, Cin, F, TH):
    bf, f32 = 2, 4
    x_blk = H * W * Cin * bf
    w_bytes = 9 * Cin * F * bf + 9 * F * F * bf
    out_blk = TH * W * F * bf
    pool_blk = (TH // 2) * (W // 2) * F * bf
    tmp = ((TH + 4) * (W + 2) * Cin * bf * 3          # input window / padded variants
           + (TH + 2) * W * 9 * Cin * bf              # conv1 patches
           + (TH + 2) * W * F * (f32 + bf) * 2        # y1 f32 + bf16 (+ select operands)
           + (TH + 2) * (W + 2) * F * bf              # W-padded conv2 input
           + TH * W * 9 * F * bf                      # conv2 patches
           + TH * W * F * f32 * 2)                    # y2 + pooling temporaries
    est = 2 * (x_blk + out_blk + pool_blk) + w_bytes + tmp
    return int(min(max(32 * 2 ** 20, 2 * est), 96 * 2 ** 20))


def conv_block_forward_nhwc(x_nhwc, w1_oihw, w2_oihw, *, strip_rows=32,
                            out_dtype=jnp.bfloat16):
    """Fast path: NHWC in / NHWC out, no layout transposes.  Returns (pooled, out)."""
    N, H, W, Cin = x_nhwc.shape
    F = w1_oihw.shape[0]
    assert w1_oihw.shape == (F, Cin, 3, 3) and w2_oihw.shape == (F, F, 3, 3)
    assert H % 2 == 0 and W % 2 == 0, "spatial dims must be even for the 2x2 pool"
    assert W % 8 == 0, "W must be a multiple of 8 (sublane tile) for the in-kernel reshapes"

    TH = _pick_strip_rows(H, strip_rows)
    nstrips = H // TH

    # bf16 MXU operands (f32 accumulation stays in-kernel).
    x = x_nhwc.astype(jnp.bfloat16)
    # OIHW -> (ky, kx, c, o) -> (9*C, F): row index = ky*3C + kx*C + c (matches patch order).
    w1 = jnp.transpose(w1_oihw, (2, 3, 1, 0)).reshape(9 * Cin, F).astype(jnp.bfloat16)
    w2 = jnp.transpose(w2_oihw, (2, 3, 1, 0)).reshape(9 * F, F).astype(jnp.bfloat16)

    kernel = functools.partial(_conv_block_kernel, H=H, W=W, Cin=Cin, F=F, TH=TH)

    cost = pl.CostEstimate(
        flops=2 * N * H * W * 9 * (Cin + F) * F,
        transcendentals=2 * N * H * W * F,
        bytes_accessed=(x.size * 2 + w1.size * 2 + w2.size * 2
                        + N * H * W * F * 2 + N * (H // 2) * (W // 2) * F * 2))

    pooled, out = pl.pallas_call(
        kernel,
        out_shape=(jax.ShapeDtypeStruct((N, H // 2, W // 2, F), out_dtype),
                   jax.ShapeDtypeStruct((N, H, W, F), out_dtype)),
        grid_spec=pltpu.PrefetchScalarGridSpec(
            num_scalar_prefetch=0,
            grid=(N, nstrips),
            in_specs=[
                # Full image stays resident across the strip axis (block index constant in s).
                pl.BlockSpec((1, H, W, Cin), lambda n, s: (n, 0, 0, 0)),
                pl.BlockSpec((9 * Cin, F), lambda n, s: (0, 0)),
                pl.BlockSpec((9 * F, F), lambda n, s: (0, 0)),
            ],
            out_specs=[
                pl.BlockSpec((1, TH // 2, W // 2, F), lambda n, s: (n, s, 0, 0)),
                pl.BlockSpec((1, TH, W, F), lambda n, s: (n, s, 0, 0)),
            ],
        ),
        compiler_params=pltpu.CompilerParams(
            dimension_semantics=("parallel", "parallel"),
            vmem_limit_bytes=_vmem_limit_bytes(H, W, Cin, F, TH)),
        cost_estimate=cost,
    )(x, w1, w2)
    return pooled, out


def conv_block_forward(x_nchw, w1_oihw, w2_oihw, **kwargs):
    """NCHW in / NCHW out, matching the PyTorch module.  Prefer the NHWC entry point to
    avoid the two layout transposes around the kernel."""
    x = jnp.transpose(x_nchw, (0, 2, 3, 1))
    pooled, out = conv_block_forward_nhwc(x, w1_oihw, w2_oihw, **kwargs)
    return jnp.transpose(pooled, (0, 3, 1, 2)), jnp.transpose(out, (0, 3, 1, 2))


def _round_bf16(a):
    return a.astype(jnp.bfloat16).astype(jnp.float32)


def _reference(x_nchw, w1_oihw, w2_oihw):
    """Pure-JAX reference of the PyTorch forward (NCHW in/out, f32).

    Conv operands are rounded to bf16 exactly like the kernel feeds the MXU;
    accumulation, SELU and pooling stay in f32 (same as the kernel)."""
    x = _round_bf16(jnp.transpose(x_nchw, (0, 2, 3, 1)).astype(jnp.float32))

    def conv(inp, w_oihw):
        p = jnp.pad(_round_bf16(inp), ((0, 0), (1, 1), (1, 1), (0, 0)), mode='reflect')
        w = _round_bf16(jnp.transpose(w_oihw, (2, 3, 1, 0)).astype(jnp.float32))
        return lax.conv_general_dilated(p, w, (1, 1), 'VALID',
                                        dimension_numbers=('NHWC', 'HWIO', 'NHWC'),
                                        preferred_element_type=jnp.float32)

    y = _selu(conv(x, w1_oihw))
    y = _selu(conv(y, w2_oihw))
    N, H, W, F = y.shape
    pooled = jnp.max(y.reshape(N, H // 2, 2, W // 2, 2, F), axis=(2, 4))
    return jnp.transpose(pooled, (0, 3, 1, 2)), jnp.transpose(y, (0, 3, 1, 2))


if __name__ == "__main__":
    N, Cin, H, W, F = 2, 4, 24, 16, 8

    key = jax.random.PRNGKey(0)
    k1, k2, k3 = jax.random.split(key, 3)
    x = jax.random.normal(k1, (N, Cin, H, W), dtype=jnp.float32)
    # Deterministic conv weights (PyTorch Conv2d OIHW shapes, bias=False).
    w1 = jax.random.uniform(k2, (F, Cin, 3, 3), jnp.float32, -1.0, 1.0) / np.sqrt(Cin * 9)
    w2 = jax.random.uniform(k3, (F, F, 3, 3), jnp.float32, -1.0, 1.0) / np.sqrt(F * 9)

    # strip_rows=8 -> 3 strips of 8 rows: exercises the first / middle / last halo paths.
    pooled, out = jax.block_until_ready(conv_block_forward(x, w1, w2, strip_rows=8))
    pooled_r, out_r = jax.block_until_ready(_reference(x, w1, w2))

    assert pooled.shape == (N, F, H // 2, W // 2) and out.shape == (N, F, H, W)
    assert pooled.dtype == jnp.bfloat16 and out.dtype == jnp.bfloat16
    # Outputs are bf16 now: compare against the bf16-rounded reference with loosened tols.
    np.testing.assert_allclose(np.asarray(out.astype(jnp.float32)),
                               np.asarray(_round_bf16(out_r)), rtol=2e-2, atol=2e-2)
    np.testing.assert_allclose(np.asarray(pooled.astype(jnp.float32)),
                               np.asarray(_round_bf16(pooled_r)), rtol=2e-2, atol=2e-2)
    print("KERNEL_OK")
</pallas_src>

<mosaic_0001>
module attributes {stable_mosaic.version = 11 : i64} {
  func.func @_conv_block_kernel(%arg0: i32, %arg1: i32, %arg2: memref<1x24x16x4xbf16, #tpu.memory_space<vmem>>, %arg3: memref<36x8xbf16, #tpu.memory_space<vmem>>, %arg4: memref<72x8xbf16, #tpu.memory_space<vmem>>, %arg5: memref<1x4x8x8xbf16, #tpu.memory_space<vmem>>, %arg6: memref<1x8x16x8xbf16, #tpu.memory_space<vmem>>) attributes {dimension_semantics = [#tpu.dimension_semantics<parallel>, #tpu.dimension_semantics<parallel>], iteration_bounds = array<i64: 2, 3>, scalar_prefetch = 0 : i64, scratch_operands = 0 : i64, tpu.core_type = #tpu.core_type<tc>, window_params = [{transform_indices = @transform_0, window_bounds = array<i64: 1, 24, 16, 4>}, {pipeline_mode = #tpu.pipeline_mode<synchronous>, transform_indices = @transform_1, window_bounds = array<i64: 36, 8>}, {pipeline_mode = #tpu.pipeline_mode<synchronous>, transform_indices = @transform_2, window_bounds = array<i64: 72, 8>}, {transform_indices = @transform_3, window_bounds = array<i64: 1, 4, 8, 8>}, {transform_indices = @transform_4, window_bounds = array<i64: 1, 8, 16, 8>}]} {
    %c0_i32 = arith.constant 0 : i32
    %0 = arith.cmpi eq, %arg1, %c0_i32 : i32
    %c2_i32 = arith.constant 2 : i32
    %1 = arith.cmpi eq, %arg1, %c2_i32 : i32
    %c8_i32 = arith.constant 8 : i32
    %2 = arith.muli %arg1, %c8_i32 : i32
    %c2_i32_0 = arith.constant 2 : i32
    %3 = arith.subi %2, %c2_i32_0 : i32
    %c0_i32_1 = arith.constant 0 : i32
    %c12_i32 = arith.constant 12 : i32
    %4 = arith.maxsi %c0_i32_1, %3 : i32
    %5 = arith.minsi %c12_i32, %4 : i32
    %c0 = arith.constant 0 : index
    %6 = arith.index_cast %5 : i32 to index
    %c0_2 = arith.constant 0 : index
    %c0_3 = arith.constant 0 : index
    %7 = vector.load %arg2[%c0, %6, %c0_2, %c0_3] : memref<1x24x16x4xbf16, #tpu.memory_space<vmem>>, vector<1x12x16x4xbf16>
    %8 = vector.shape_cast %7 : vector<1x12x16x4xbf16> to vector<12x16x4xbf16>
    %9 = vector.extract_strided_slice %8 {offsets = [2, 0, 0], sizes = [1, 16, 4], strides = [1, 1, 1]} : vector<12x16x4xbf16> to vector<1x16x4xbf16>
    %10 = vector.extract_strided_slice %8 {offsets = [1, 0, 0], sizes = [1, 16, 4], strides = [1, 1, 1]} : vector<12x16x4xbf16> to vector<1x16x4xbf16>
    %11 = vector.extract_strided_slice %8 {offsets = [0, 0, 0], sizes = [10, 16, 4], strides = [1, 1, 1]} : vector<12x16x4xbf16> to vector<10x16x4xbf16>
    %12 = tpu.concatenate %9, %10, %11 in 0 : vector<1x16x4xbf16>, vector<1x16x4xbf16>, vector<10x16x4xbf16> -> vector<12x16x4xbf16>
    %13 = vector.extract_strided_slice %8 {offsets = [2, 0, 0], sizes = [10, 16, 4], strides = [1, 1, 1]} : vector<12x16x4xbf16> to vector<10x16x4xbf16>
    %14 = vector.extract_strided_slice %8 {offsets = [10, 0, 0], sizes = [1, 16, 4], strides = [1, 1, 1]} : vector<12x16x4xbf16> to vector<1x16x4xbf16>
    %15 = vector.extract_strided_slice %8 {offsets = [9, 0, 0], sizes = [1, 16, 4], strides = [1, 1, 1]} : vector<12x16x4xbf16> to vector<1x16x4xbf16>
    %16 = tpu.concatenate %13, %14, %15 in 0 : vector<10x16x4xbf16>, vector<1x16x4xbf16>, vector<1x16x4xbf16> -> vector<12x16x4xbf16>
    %17 = arith.select %1, %16, %8 : vector<12x16x4xbf16>
    %18 = arith.select %0, %12, %17 : vector<12x16x4xbf16>
    %19 = vector.extract_strided_slice %18 {offsets = [0, 1, 0], sizes = [12, 1, 4], strides = [1, 1, 1]} : vector<12x16x4xbf16> to vector<12x1x4xbf16>
    %20 = vector.extract_strided_slice %18 {offsets = [0, 14, 0], sizes = [12, 1, 4], strides = [1, 1, 1]} : vector<12x16x4xbf16> to vector<12x1x4xbf16>
    %21 = tpu.concatenate %19, %18, %20 in 1 : vector<12x1x4xbf16>, vector<12x16x4xbf16>, vector<12x1x4xbf16> -> vector<12x18x4xbf16>
    %22 = vector.extract_strided_slice %21 {offsets = [0, 0, 0], sizes = [12, 16, 4], strides = [1, 1, 1]} : vector<12x18x4xbf16> to vector<12x16x4xbf16>
    %23 = vector.extract_strided_slice %21 {offsets = [0, 1, 0], sizes = [12, 16, 4], strides = [1, 1, 1]} : vector<12x18x4xbf16> to vector<12x16x4xbf16>
    %24 = vector.extract_strided_slice %21 {offsets = [0, 2, 0], sizes = [12, 16, 4], strides = [1, 1, 1]} : vector<12x18x4xbf16> to vector<12x16x4xbf16>
    %25 = tpu.concatenate %22, %23, %24 in 2 : vector<12x16x4xbf16>, vector<12x16x4xbf16>, vector<12x16x4xbf16> -> vector<12x16x12xbf16>
    %26 = vector.extract_strided_slice %25 {offsets = [0, 0, 0], sizes = [10, 16, 12], strides = [1, 1, 1]} : vector<12x16x12xbf16> to vector<10x16x12xbf16>
    %27 = vector.extract_strided_slice %25 {offsets = [1, 0, 0], sizes = [10, 16, 12], strides = [1, 1, 1]} : vector<12x16x12xbf16> to vector<10x16x12xbf16>
    %28 = vector.extract_strided_slice %25 {offsets = [2, 0, 0], sizes = [10, 16, 12], strides = [1, 1, 1]} : vector<12x16x12xbf16> to vector<10x16x12xbf16>
    %29 = tpu.concatenate %26, %27, %28 in 2 : vector<10x16x12xbf16>, vector<10x16x12xbf16>, vector<10x16x12xbf16> -> vector<10x16x36xbf16>
    %30 = vector.shape_cast %29 : vector<10x16x36xbf16> to vector<160x36xbf16>
    %c0_4 = arith.constant 0 : index
    %c0_5 = arith.constant 0 : index
    %31 = vector.load %arg3[%c0_4, %c0_5] : memref<36x8xbf16, #tpu.memory_space<vmem>>, vector<36x8xbf16>
    %cst = arith.constant dense<0.000000e+00> : vector<160x8xf32>
    %32 = tpu.matmul %30, %31, %cst {dimension_numbers = #tpu.dot_dimension_numbers<[1], [0], [0], [1], [0, 0, 1, 1], [], []>} : vector<160x36xbf16>, vector<36x8xbf16>, vector<160x8xf32> -> vector<160x8xf32>
    %cst_6 = arith.constant 0.000000e+00 : f32
    %33 = vector.broadcast %cst_6 : f32 to vector<160x8xf32>
    %34 = arith.cmpf ogt, %32, %33 : vector<160x8xf32>
    %35 = math.exp %32 : vector<160x8xf32>
    %cst_7 = arith.constant 1.000000e+00 : f32
    %36 = vector.broadcast %cst_7 : f32 to vector<160x8xf32>
    %37 = arith.subf %35, %36 : vector<160x8xf32>
    %cst_8 = arith.constant 1.67326319 : f32
    %38 = vector.broadcast %cst_8 : f32 to vector<160x8xf32>
    %39 = arith.mulf %38, %37 : vector<160x8xf32>
    %40 = arith.select %34, %32, %39 : vector<160x8xi1>, vector<160x8xf32>
    %cst_9 = arith.constant 1.05070102 : f32
    %41 = vector.broadcast %cst_9 : f32 to vector<160x8xf32>
    %42 = arith.mulf %41, %40 : vector<160x8xf32>
    %43 = vector.shape_cast %42 : vector<160x8xf32> to vector<10x16x8xf32>
    %44 = arith.truncf %43 : vector<10x16x8xf32> to vector<10x16x8xbf16>
    %45 = vector.extract_strided_slice %44 {offsets = [2, 0, 0], sizes = [1, 16, 8], strides = [1, 1, 1]} : vector<10x16x8xbf16> to vector<1x16x8xbf16>
    %46 = vector.extract_strided_slice %44 {offsets = [1, 0, 0], sizes = [9, 16, 8], strides = [1, 1, 1]} : vector<10x16x8xbf16> to vector<9x16x8xbf16>
    %47 = tpu.concatenate %45, %46 in 0 : vector<1x16x8xbf16>, vector<9x16x8xbf16> -> vector<10x16x8xbf16>
    %48 = vector.extract_strided_slice %44 {offsets = [0, 0, 0], sizes = [9, 16, 8], strides = [1, 1, 1]} : vector<10x16x8xbf16> to vector<9x16x8xbf16>
    %49 = vector.extract_strided_slice %44 {offsets = [7, 0, 0], sizes = [1, 16, 8], strides = [1, 1, 1]} : vector<10x16x8xbf16> to vector<1x16x8xbf16>
    %50 = tpu.concatenate %48, %49 in 0 : vector<9x16x8xbf16>, vector<1x16x8xbf16> -> vector<10x16x8xbf16>
    %51 = arith.select %1, %50, %44 : vector<10x16x8xbf16>
    %52 = arith.select %0, %47, %51 : vector<10x16x8xbf16>
    %53 = vector.extract_strided_slice %52 {offsets = [0, 1, 0], sizes = [10, 1, 8], strides = [1, 1, 1]} : vector<10x16x8xbf16> to vector<10x1x8xbf16>
    %54 = vector.extract_strided_slice %52 {offsets = [0, 14, 0], sizes = [10, 1, 8], strides = [1, 1, 1]} : vector<10x16x8xbf16> to vector<10x1x8xbf16>
    %55 = tpu.concatenate %53, %52, %54 in 1 : vector<10x1x8xbf16>, vector<10x16x8xbf16>, vector<10x1x8xbf16> -> vector<10x18x8xbf16>
    %56 = vector.extract_strided_slice %55 {offsets = [0, 0, 0], sizes = [10, 16, 8], strides = [1, 1, 1]} : vector<10x18x8xbf16> to vector<10x16x8xbf16>
    %57 = vector.extract_strided_slice %55 {offsets = [0, 1, 0], sizes = [10, 16, 8], strides = [1, 1, 1]} : vector<10x18x8xbf16> to vector<10x16x8xbf16>
    %58 = vector.extract_strided_slice %55 {offsets = [0, 2, 0], sizes = [10, 16, 8], strides = [1, 1, 1]} : vector<10x18x8xbf16> to vector<10x16x8xbf16>
    %59 = tpu.concatenate %56, %57, %58 in 2 : vector<10x16x8xbf16>, vector<10x16x8xbf16>, vector<10x16x8xbf16> -> vector<10x16x24xbf16>
    %60 = vector.extract_strided_slice %59 {offsets = [0, 0, 0], sizes = [8, 16, 24], strides = [1, 1, 1]} : vector<10x16x24xbf16> to vector<8x16x24xbf16>
    %61 = vector.extract_strided_slice %59 {offsets = [1, 0, 0], sizes = [8, 16, 24], strides = [1, 1, 1]} : vector<10x16x24xbf16> to vector<8x16x24xbf16>
    %62 = vector.extract_strided_slice %59 {offsets = [2, 0, 0], sizes = [8, 16, 24], strides = [1, 1, 1]} : vector<10x16x24xbf16> to vector<8x16x24xbf16>
    %63 = tpu.concatenate %60, %61, %62 in 2 : vector<8x16x24xbf16>, vector<8x16x24xbf16>, vector<8x16x24xbf16> -> vector<8x16x72xbf16>
    %64 = vector.shape_cast %63 : vector<8x16x72xbf16> to vector<128x72xbf16>
    %c0_10 = arith.constant 0 : index
    %c0_11 = arith.constant 0 : index
    %65 = vector.load %arg4[%c0_10, %c0_11] : memref<72x8xbf16, #tpu.memory_space<vmem>>, vector<72x8xbf16>
    %cst_12 = arith.constant dense<0.000000e+00> : vector<128x8xf32>
    %66 = tpu.matmul %64, %65, %cst_12 {dimension_numbers = #tpu.dot_dimension_numbers<[1], [0], [0], [1], [0, 0, 1, 1], [], []>} : vector<128x72xbf16>, vector<72x8xbf16>, vector<128x8xf32> -> vector<128x8xf32>
    %cst_13 = arith.constant 0.000000e+00 : f32
    %67 = vector.broadcast %cst_13 : f32 to vector<128x8xf32>
    %68 = arith.cmpf ogt, %66, %67 : vector<128x8xf32>
    %69 = math.exp %66 : vector<128x8xf32>
    %cst_14 = arith.constant 1.000000e+00 : f32
    %70 = vector.broadcast %cst_14 : f32 to vector<128x8xf32>
    %71 = arith.subf %69, %70 : vector<128x8xf32>
    %cst_15 = arith.constant 1.67326319 : f32
    %72 = vector.broadcast %cst_15 : f32 to vector<128x8xf32>
    %73 = arith.mulf %72, %71 : vector<128x8xf32>
    %74 = arith.select %68, %66, %73 : vector<128x8xi1>, vector<128x8xf32>
    %cst_16 = arith.constant 1.05070102 : f32
    %75 = vector.broadcast %cst_16 : f32 to vector<128x8xf32>
    %76 = arith.mulf %75, %74 : vector<128x8xf32>
    %77 = vector.shape_cast %76 : vector<128x8xf32> to vector<8x16x8xf32>
    %78 = arith.truncf %77 : vector<8x16x8xf32> to vector<8x16x8xbf16>
    %c0_17 = arith.constant 0 : index
    %c0_18 = arith.constant 0 : index
    %c0_19 = arith.constant 0 : index
    %c0_20 = arith.constant 0 : index
    %79 = vector.load %arg6[%c0_17, %c0_18, %c0_19, %c0_20] : memref<1x8x16x8xbf16, #tpu.memory_space<vmem>>, vector<1x8x16x8xbf16>
    %80 = vector.shape_cast %79 : vector<1x8x16x8xbf16> to vector<8x16x8xbf16>
    %81 = vector.shape_cast %78 : vector<8x16x8xbf16> to vector<1x8x16x8xbf16>
    tpu.vector_store %arg6[%c0_17, %c0_18, %c0_19, %c0_20], %81 {strides = array<i32>} : memref<1x8x16x8xbf16, #tpu.memory_space<vmem>>, vector<1x8x16x8xbf16>,
    %82 = vector.shape_cast %77 : vector<8x16x8xf32> to vector<4x2x16x8xf32>
    %83 = vector.extract_strided_slice %82 {offsets = [0, 0, 0, 0], sizes = [4, 1, 16, 8], strides = [1, 1, 1, 1]} : vector<4x2x16x8xf32> to vector<4x1x16x8xf32>
    %84 = vector.shape_cast %83 : vector<4x1x16x8xf32> to vector<4x16x8xf32>
    %85 = vector.extract_strided_slice %82 {offsets = [0, 1, 0, 0], sizes = [4, 1, 16, 8], strides = [1, 1, 1, 1]} : vector<4x2x16x8xf32> to vector<4x1x16x8xf32>
    %86 = vector.shape_cast %85 : vector<4x1x16x8xf32> to vector<4x16x8xf32>
    %87 = arith.maximumf %84, %86 : vector<4x16x8xf32>
    %88 = vector.shape_cast %87 : vector<4x16x8xf32> to vector<4x8x2x8xf32>
    %89 = vector.extract_strided_slice %88 {offsets = [0, 0, 0, 0], sizes = [4, 8, 1, 8], strides = [1, 1, 1, 1]} : vector<4x8x2x8xf32> to vector<4x8x1x8xf32>
    %90 = vector.shape_cast %89 : vector<4x8x1x8xf32> to vector<4x8x8xf32>
    %91 = vector.extract_strided_slice %88 {offsets = [0, 0, 1, 0], sizes = [4, 8, 1, 8], strides = [1, 1, 1, 1]} : vector<4x8x2x8xf32> to vector<4x8x1x8xf32>
    %92 = vector.shape_cast %91 : vector<4x8x1x8xf32> to vector<4x8x8xf32>
    %93 = arith.maximumf %90, %92 : vector<4x8x8xf32>
    %94 = arith.truncf %93 : vector<4x8x8xf32> to vector<4x8x8xbf16>
    %c0_21 = arith.constant 0 : index
    %c0_22 = arith.constant 0 : index
    %c0_23 = arith.constant 0 : index
    %c0_24 = arith.constant 0 : index
    %95 = vector.load %arg5[%c0_21, %c0_22, %c0_23, %c0_24] : memref<1x4x8x8xbf16, #tpu.memory_space<vmem>>, vector<1x4x8x8xbf16>
    %96 = vector.shape_cast %95 : vector<1x4x8x8xbf16> to vector<4x8x8xbf16>
    %97 = vector.shape_cast %94 : vector<4x8x8xbf16> to vector<1x4x8x8xbf16>
    tpu.vector_store %arg5[%c0_21, %c0_22, %c0_23, %c0_24], %97 {strides = array<i32>} : memref<1x4x8x8xbf16, #tpu.memory_space<vmem>>, vector<1x4x8x8xbf16>,
    return
  }
  func.func @transform_0(%arg0: i32, %arg1: i32) -> (i32, i32, i32, i32) {
    %c0_i32 = arith.constant 0 : i32
    %c0_i32_0 = arith.constant 0 : i32
    %c0_i32_1 = arith.constant 0 : i32
    %c0_i32_2 = arith.constant 0 : i32
    return %arg0, %c0_i32, %c0_i32_0, %c0_i32_1 : i32, i32, i32, i32
  }
  func.func @transform_1(%arg0: i32, %arg1: i32) -> (i32, i32) {
    %c0_i32 = arith.constant 0 : i32
    %c0_i32_0 = arith.constant 0 : i32
    %c0_i32_1 = arith.constant 0 : i32
    return %c0_i32, %c0_i32_0 : i32, i32
  }
  func.func @transform_2(%arg0: i32, %arg1: i32) -> (i32, i32) {
    %c0_i32 = arith.constant 0 : i32
    %c0_i32_0 = arith.constant 0 : i32
    %c0_i32_1 = arith.constant 0 : i32
    return %c0_i32, %c0_i32_0 : i32, i32
  }
  func.func @transform_3(%arg0: i32, %arg1: i32) -> (i32, i32, i32, i32) {
    %c0_i32 = arith.constant 0 : i32
    %c0_i32_0 = arith.constant 0 : i32
    %c0_i32_1 = arith.constant 0 : i32
    return %arg0, %arg1, %c0_i32, %c0_i32_0 : i32, i32, i32, i32
  }
  func.func @transform_4(%arg0: i32, %arg1: i32) -> (i32, i32, i32, i32) {
    %c0_i32 = arith.constant 0 : i32
    %c0_i32_0 = arith.constant 0 : i32
    %c0_i32_1 = arith.constant 0 : i32
    return %arg0, %arg1, %c0_i32, %c0_i32_0 : i32, i32, i32, i32
  }
}

</mosaic_0001>

<bundles_post_ra>
// kernel: tpu_custom_call.1
= control target key start
LH: loop header
LB: loop body
LE: loop exit
PB: predicated region body
PF: predicated region fallthrough
CT: control target
= control target key end

     0   :  { %s3021_s15 = smov 0   ;;  %s3023_s16 = smov 0   ;;  %s4086_s0 = inlined_call_operand.vmem [shape: bf16[2,24,16,4], index: 0, kind: input, shape index: {}]   ;;  %s4087_s1 = inlined_call_operand.vmem [shape: bf16[36,8], index: 1, kind: input, shape index: {}]   ;;  %s4088_s2 = inlined_call_operand.vmem [shape: bf16[72,8], index: 2, kind: input, shape index: {}]   ;;  %s4089_s3 = inlined_call_operand.vmem [shape: bf16[2,12,8,8], index: 3, kind: output, shape index: {0}]   ;;  %s4090_s4 = inlined_call_operand.vmem [shape: bf16[2,24,16,8], index: 4, kind: output, shape index: {1}]  }
   0x1   :  { %s3025_s17 = smov 0   ;;  %s3027_s18 = smov 0  }
   0x2   :  { %s3029_s19 = smov 0  }
   0x3 LB: > { %s24_s20 = sadd.s32 1, %s2980_s17  ;;  %s27_s21 = sadd.s32 1, %s2984_s18  ;;  %s2988_s19 = sphi %s3029_s19, %s15_s19   ;;  %s2984_s18 = sphi %s3027_s18, %s4101_s18   ;;  %s2980_s17 = sphi %s3025_s17, %s4100_s17   ;;  %s2976_s16 = sphi %s3023_s16, %s4099_s16   ;;  %s2972_s15 = sphi %s3021_s15, %s4098_s15  }
   0x4   : > { %p25_p0 = scmp.ge.s32.totalorder %s24_s20, 3  ;;  %p2684_p1 = scmp.ge.s32.totalorder %s2988_s19, 1 }
   0x5   : > { %p181_p2 = scmp.lt.s32.totalorder %s2988_s19, 7 }
   0x6   : > { %s4103_s20 = smov (%p25_p0, %s24_s20), 0  ;;  %s4105_s21 = smov (!%p25_p0, %s27_s21), %s2984_s18 }
   0x7   : > { %p182_p3 = pnand %p2684_p1, %p181_p2  ;;  %p29_p4 = scmp.ge.s32.totalorder %s4105_s21, 2 }
   0x8   : > { %p221_p5 = scmp.lt.s32.totalorder (!%p182_p3), %s2976_s16, 1  ;;  %s3054_s22 = sshll.u32 (!%p182_p3), %s2972_s15, 3 }
   0x9   : > { %s4107_s21 = smov (%p29_p4, %s4105_s21), 0  ;;  %185 = sbr.rel (%p182_p3) target bundleno = 1025 (0x401), region = 32 }
   0xa   : > { %p249_p6 = scmp.eq.s32.totalorder (!%p182_p3), %s2972_s15, 2  ;;  %s2692_s23 = sadd.s32 (!%p182_p3), 4294967294, %s3054_s22 }
   0xb   : > { %p252_p7 = scmp.gt.s32.totalorder (!%p182_p3), %s2692_s23, 0  ;;  %p2693_p8 = scmp.lt.s32.totalorder (!%p182_p3), %s2692_s23, 12 }
   0xc   : > { %p248_p9 = scmp.eq.s32.totalorder (!%p182_p3), %s2972_s15, 0  ;;  %s2990_s6 = smov (!%p182_p3), 8  }
   0xd   : > { %s2991_s7 = smov (!%p182_p3), 4   ;;  %s2992_s8 = smov (!%p182_p3), 12  }
   0xe   : > { %s4109_s16 = smov (!%p221_p5, %s2976_s16), 1  ;;  %s4111_s23 = smov (!%p252_p7, %s2692_s23), 0  ;;  %vm636_vm1 = vsmask.f32 256  ;;  %vm635_vm3 = vcmask 1040384   ;;  %vm855_vm4 = vcmask 1046528  }
   0xf   : > { %s2829_s24 = smul.u32 192, %s4109_s16  ;;  %s4113_s23 = smov (!%p2693_p8, %s4111_s23), 12  ;;  %vm662_vm5 = vsmask.f32 7424  ;;  %vm3168_vm6 = vmand %vm635_vm3, %vm636_vm1  ;;  %vm916_vm7 = vcmask 31744   ;;  %vm941_vm8 = vcmask 64512  }
  0x10   : > { %s283_s28 = scalar_select %p249_p6, 1, 0  ;;  %vm1100_vm9 = vcmask 1041408   ;;  %vm1017_vm10 = vcmask 97280   ;;  %vm1038_vm11 = vcmask 195584   ;;  %vm1079_vm12 = vcmask 293888  }
  0x11   : > { %s225_s27 = scalar_lea.vmem %s4086_s0, %s2829_s24  ;;  %s2814_s30 = sshll.u32 %s4113_s23, 3 }
  0x12   : > { %v284_v0 = vstv %s283_s28  ;;  %s308_s29 = scalar_select %p248_p9, 1, 0 }
  0x13   : > { %vm3065_vm0 = vcmp.eq.s32.totalorder %v284_v0, 1  ;;  %s3069_s5 = scalar_lea.vmem %s225_s27, %s2814_s30  ;;  %s2993_s9 = smov 24  }
  0x14   : > { %v309_v2 = vstv %s308_s29  ;;  %v3072_v3 = vld [vmem:[%s3069_s5 + $0x8] sm:$0xf]  ;;  %v3075_v4 = vld [vmem:[%s3069_s5 + $0xc] sm:$0xf]  ;;  %v3078_v5 = vld [vmem:[%s3069_s5 + $0x18] sm:$0xf] }
  0x15   : > { %v3081_v6 = vld [vmem:[%s3069_s5 + $0x1c] sm:$0xf]  ;;  %v288_v7 = vsel %vm3065_vm0, %v3078_v5, %v3072_v3  ;;  %vm3087_vm2 = vcmp.eq.s32.totalorder %v309_v2, 1  ;;  %v3092_v9 = vld [vmem:[%s3069_s5] sm:$0xf]  ;;  %s2994_s24 = smov 16  }
  0x16   : > { %v289_v10 = vsel %vm3065_vm0, %v3081_v6, %v3075_v4  ;;  %v313_v11 = vsel %vm3087_vm2, %v3072_v3, %v288_v7  ;;  %v3102_v12 = vld [vmem:[%s3069_s5 + $0x4] sm:$0xf]  ;;  %v3105_v13 = vld [vmem:[%s3069_s5 + $0x10] sm:$0xf]  ;;  %v3108_v14 = vld [vmem:[%s3069_s5 + $0x14] sm:$0xf] }
  0x17   : > { %v314_v15 = vsel %vm3087_vm2, %v3075_v4, %v289_v10  ;;  %v348_v16 = vunpack.c.l.b16 %v313_v11  ;;  %v3114_v17 = vld [vmem:[%s3069_s5 + $0x20] sm:$0xf]  ;;  %v3117_v18 = vld [vmem:[%s3069_s5 + $0x24] sm:$0xf]  ;;  %v3120_v19 = vld [vmem:[%s3069_s5 + $0x30] sm:$0xf] }
  0x18   : > { %v432_v20 = vunpack.c.l.b16 %v314_v15  ;;  %v290_v21 = vsel %vm3065_vm0, %v3114_v17, %v3105_v13  ;;  %v291_v22 = vsel %vm3065_vm0, %v3117_v18, %v3108_v14  ;;  %v3131_v23 = vld [vmem:[%s3069_s5 + $0x34] sm:$0xf]  ;;  %v3134_v24 = vld [vmem:[%s3069_s5 + $0x40] sm:$0xf]  ;;  %v3137_v25 = vld [vmem:[%s3069_s5 + $0x44] sm:$0xf] }
  0x19   : > { %v360_v26 = vpack.c.b16 %v348_v16, %v348_v16  ;;  %v315_v27 = vsel %vm3087_vm2, %v3092_v9, %v290_v21  ;;  %v316_v28 = vsel %vm3087_vm2, %v3102_v12, %v291_v22  ;;  %v298_v29 = vsel %vm3065_vm0, %v3134_v24, %v3120_v19  ;;  %v3150_v30 = vld [vmem:[%s3069_s5 + $0x28] sm:$0xf]  ;;  %v3182_v21 = vld [vmem:[%s3069_s5 + $0x2c] sm:$0xf]  ;;  %s2995_s25 = smov 48   ;;  %p239_p10 = scmp.lt.s32.totalorder %s3054_s22, 23 }
  0x1a   : > { %v444_v31 = vpack.c.b16 %v432_v20, %v348_v16  ;;  %v564_v32 = vpack.c.b16 %v432_v20, %v432_v20  ;;  %v349_v33 = vunpack.c.l.b16 %v315_v27  ;;  %v433_v34 = vunpack.c.l.b16 %v316_v28  ;;  %s2830_s26 = smul.u32 12, %s4109_s16 }
  0x1b   : > { %v375_v35 = vshrl.u32 %v360_v26, 16  ;;  %v299_v36 = vsel %vm3065_vm0, %v3137_v25, %v3131_v23  ;;  %v323_v37 = vsel %vm3087_vm2, %v3114_v17, %v298_v29  ;;  %v292_v38 = vsel %vm3065_vm0, %v3150_v30, %v3078_v5  ;;  %s4115_s22 = smov (!%p239_p10, %s3054_s22), 23 }
  0x1c   : > { %v463_v39 = vshrl.u32 %v444_v31, 16  ;;  %v466_v40 = vshll.u32 %v444_v31, 16  ;;  %v580_v41 = vshll.u32 %v564_v32, 16  ;;  %v361_v42 = vpack.c.b16 %v349_v33, %v349_v33  ;;  %s2689_s11 = sshll.u32 %s4115_s22, 1 }
  0x1d   : > { %v445_v43 = vpack.c.b16 %v433_v34, %v349_v33  ;;  %v565_v44 = vpack.c.b16 %v433_v34, %v433_v34  ;;  %v324_v45 = vsel %vm3087_vm2, %v3117_v18, %v299_v36  ;;  %v353_v46 = vunpack.c.l.b16 %v323_v37 }
  0x1e   : > { %v465_v47 = vrot.slane %v463_v39, 7  ;;  %v582_v48 = vrot.slane %v580_v41, 3  ;;  %v378_v49 = vshrl.u32 %v361_v42, 16  ;;  %v437_v50 = vunpack.c.l.b16 %v324_v45  ;;  %v3197_v39 = vld [vmem:[%s3069_s5 + $0x38] sm:$0xf] }
  0x1f   : > { %v470_v52 = vshrl.u32 %v445_v43, 16  ;;  %v473_v53 = vshll.u32 %v445_v43, 16  ;;  %v584_v54 = vshll.u32 %v565_v44, 16  ;;  %v365_v55 = vpack.c.b16 %v353_v46, %v353_v46  ;;  %v3202_v44 = vld [vmem:[%s3069_s5 + $0x48] sm:$0xf] }
  0x20   : > { %v468_v56 = vor.u32 %v466_v40, %v465_v47  ;;  %v651_v57 = vsel %vm3168_vm6, %v465_v47, %v582_v48  ;;  %v449_v58 = vpack.c.b16 %v437_v50, %v353_v46  ;;  %v569_v59 = vpack.c.b16 %v437_v50, %v437_v50  ;;  %v3218_v50 = vld [vmem:[%s3069_s5 + $0x4c] sm:$0xf] }
  0x21   : > { %v683_v60 = vshll.u32 %v651_v57, 16  ;;  %v860_v61 = vrot.slane %v651_v57, 1  ;;  %v472_v62 = vrot.slane %v470_v52, 7  ;;  %v586_v63 = vrot.slane %v584_v54, 3 }
  0x22   : > { %v3176_v0 = vsel %vm3168_vm6, %v375_v35, %v468_v56  ;;  %v390_v2 = vshrl.u32 %v365_v55, 16  ;;  %v498_v7 = vshrl.u32 %v449_v58, 16  ;;  %v501_v10 = vshll.u32 %v449_v58, 16 }
  0x23   : > { %v676_v11 = vshrl.u32 %v3176_v0, 16  ;;  %v678_v15 = vshll.u32 %v3176_v0, 16  ;;  %v685_v16 = vrot.slane %v683_v60, 1  ;;  %v859_v20 = vrot.slane %v3176_v0, 1 }
  0x24   : > { %v475_v22 = vor.u32 %v473_v53, %v472_v62  ;;  %v652_v26 = vsel %vm3168_vm6, %v472_v62, %v586_v63  ;;  %v500_v27 = vrot.slane %v498_v7, 7  ;;  %v600_v28 = vshll.u32 %v569_v59, 16 }
  0x25   : > { %v680_v29 = vrot.slane %v678_v15, 1  ;;  %v861_v31 = vsel %vm855_vm4, %v859_v20, %v860_v61  ;;  %v695_v32 = vshll.u32 %v652_v26, 16  ;;  %v863_v33 = vrot.slane %v652_v26, 1 }
  0x26   : > { %894 = vrot.lane.b32.xlu1 %v861_v31, %s2990_s6  ;;  %v3190_v34 = vsel %vm3168_vm6, %v378_v49, %v475_v22  ;;  %v503_v35 = vor.u32 %v501_v10, %v500_v27  ;;  %v602_v36 = vrot.slane %v600_v28, 3  ;;  %v293_v37 = vsel %vm3065_vm0, %v3182_v21, %v3081_v6  ;;  %v3215_v49 = vld [vmem:[%s3069_s5 + $0x3c] sm:$0xf] }
  0x27   : > { %v681_v40 = vor.u32 %v680_v29, %v676_v11  ;;  %v688_v41 = vshrl.u32 %v3190_v34, 16  ;;  %v690_v42 = vshll.u32 %v3190_v34, 16  ;;  %v697_v43 = vrot.slane %v695_v32, 1 }
  0x28   : > { %v3206_v45 = vsel %vm3168_vm6, %v390_v2, %v503_v35  ;;  %v656_v46 = vsel %vm3168_vm6, %v500_v27, %v602_v36  ;;  %v862_v47 = vrot.slane %v3190_v34, 1  ;;  %v317_v48 = vsel %vm3087_vm2, %v3072_v3, %v292_v38 }
  0x29   : > { %v686_v52 = vsel %vm662_vm5, %v681_v40, %v685_v16  ;;  %v692_v53 = vrot.slane %v690_v42, 1  ;;  %v874_v54 = vrot.slane %v3206_v45, 1  ;;  %v875_v55 = vrot.slane %v656_v46, 1 }
  0x2a   : > { %809 = vrot.lane.b32.xlu0 %v686_v52, %s2991_s7  ;;  %v864_v56 = vsel %vm855_vm4, %v862_v47, %v863_v33  ;;  %v318_v57 = vsel %vm3087_vm2, %v3075_v4, %v293_v37  ;;  %v350_v3 = vunpack.c.l.b16 %v317_v48  ;;  %v300_v38 = vsel %vm3065_vm0, %v3202_v44, %v3197_v39 }
  0x2b   : > { %v693_v58 = vor.u32 %v692_v53, %v688_v41  ;;  %v876_v59 = vsel %vm855_vm4, %v874_v54, %v875_v55  ;;  %v434_v60 = vunpack.c.l.b16 %v318_v57  ;;  %v301_v61 = vsel %vm3065_vm0, %v3218_v50, %v3215_v49 }
  0x2c   : > { %904 = vrot.lane.b32.xlu2 %v876_v59, %s2990_s6  ;;  %v362_v62 = vpack.c.b16 %v350_v3, %v350_v3  ;;  %v325_v4 = vsel %vm3087_vm2, %v3150_v30, %v300_v38  ;;  %v326_v63 = vsel %vm3087_vm2, %v3182_v21, %v301_v61  ;;  %v294_v11 = vsel %vm3065_vm0, %v3120_v19, %v3114_v17 }
  0x2d   : > { %v446_v2 = vpack.c.b16 %v434_v60, %v350_v3  ;;  %v566_v7 = vpack.c.b16 %v434_v60, %v434_v60  ;;  %v354_v10 = vunpack.c.l.b16 %v325_v4  ;;  %v438_v15 = vunpack.c.l.b16 %v326_v63 }
  0x2e   : > { %896 = vrot.lane.b32.xlu1 %v864_v56, %s2990_s6  ;;  %v736_v16 = vshrl.u32 %v3206_v45, 16  ;;  %v738_v20 = vshll.u32 %v3206_v45, 16  ;;  %v743_v22 = vshll.u32 %v656_v46, 16  ;;  %v698_v26 = vsel %vm662_vm5, %v693_v58, %v697_v43 }
  0x2f   : > { %v477_v27 = vshrl.u32 %v446_v2, 16  ;;  %v480_v28 = vshll.u32 %v446_v2, 16  ;;  %v588_v29 = vshll.u32 %v566_v7, 16  ;;  %v381_v31 = vshrl.u32 %v362_v62, 16 }
  0x30   : > { %v366_v32 = vpack.c.b16 %v354_v10, %v354_v10  ;;  %v450_v33 = vpack.c.b16 %v438_v15, %v354_v10  ;;  %v570_v35 = vpack.c.b16 %v438_v15, %v438_v15  ;;  %v740_v17 = vrot.slane %v738_v20, 1 }
  0x31   : > { %v479_v36 = vrot.slane %v477_v27, 7  ;;  %v590_v37 = vrot.slane %v588_v29, 3  ;;  %v295_v40 = vsel %vm3065_vm0, %v3131_v23, %v3117_v18  ;;  %v3256_v46 = vrot.slane %v743_v22, 1  ;;  %v3277_v22 = vld [vmem:[%s3069_s5 + $0x50] sm:$0xf] }
  0x32   : > { %811 = vrot.lane.b32.xlu0 %v698_v26, %s2991_s7  ;;  %v505_v41 = vshrl.u32 %v450_v33, 16  ;;  %v508_v42 = vshll.u32 %v450_v33, 16  ;;  %v604_v43 = vshll.u32 %v570_v35, 16  ;;  %v319_v52 = vsel %vm3087_vm2, %v3105_v13, %v294_v11 }
  0x33   : > { %v482_v47 = vor.u32 %v480_v28, %v479_v36  ;;  %v653_v48 = vsel %vm3168_vm6, %v479_v36, %v590_v37  ;;  %v320_v53 = vsel %vm3087_vm2, %v3108_v14, %v295_v40  ;;  %v393_v3 = vshrl.u32 %v366_v32, 16 }
  0x34   : > { %v866_v18 = vrot.slane %v653_v48, 1  ;;  %v707_v54 = vshll.u32 %v653_v48, 16  ;;  %v507_v55 = vrot.slane %v505_v41, 7  ;;  %v606_v56 = vrot.slane %v604_v43, 3 }
  0x35   : > { %v3268_v57 = vsel %vm3168_vm6, %v381_v31, %v482_v47  ;;  %v351_v38 = vunpack.c.l.b16 %v319_v52  ;;  %v435_v58 = vunpack.c.l.b16 %v320_v53  ;;  %v3284_v31 = vld [vmem:[%s3069_s5 + $0x54] sm:$0xf]  ;;  %v741_v53 = vor.u32 %v740_v17, %v736_v16 }
  0x36   : > { %v865_v59 = vrot.slane %v3268_v57, 1  ;;  %v700_v60 = vshrl.u32 %v3268_v57, 16  ;;  %v702_v61 = vshll.u32 %v3268_v57, 16  ;;  %v709_v62 = vrot.slane %v707_v54, 1 }
  0x37   : > { %v510_v4 = vor.u32 %v508_v42, %v507_v55  ;;  %v657_v63 = vsel %vm3168_vm6, %v507_v55, %v606_v56  ;;  %v363_v2 = vpack.c.b16 %v351_v38, %v351_v38  ;;  %v447_v7 = vpack.c.b16 %v435_v58, %v351_v38 }
  0x38   : > { %v867_v10 = vsel %vm855_vm4, %v865_v59, %v866_v18  ;;  %v704_v11 = vrot.slane %v702_v61, 1  ;;  %v755_v15 = vshll.u32 %v657_v63, 16  ;;  %v878_v20 = vrot.slane %v657_v63, 1 }
  0x39   : > { %v3281_v26 = vsel %vm3168_vm6, %v393_v3, %v510_v4  ;;  %v384_v27 = vshrl.u32 %v363_v2, 16  ;;  %v484_v28 = vshrl.u32 %v447_v7, 16  ;;  %v487_v29 = vshll.u32 %v447_v7, 16 }
  0x3a   : > { %898 = vrot.lane.b32.xlu0 %v867_v10, %s2990_s6  ;;  %v705_v32 = vor.u32 %v704_v11, %v700_v60  ;;  %v748_v33 = vshrl.u32 %v3281_v26, 16  ;;  %v750_v35 = vshll.u32 %v3281_v26, 16  ;;  %v757_v36 = vrot.slane %v755_v15, 1 }
  0x3b   : > { %v877_v37 = vrot.slane %v3281_v26, 1  ;;  %v486_v40 = vrot.slane %v484_v28, 7  ;;  %v567_v41 = vpack.c.b16 %v435_v58, %v435_v58  ;;  %v302_v42 = vsel %vm3065_vm0, %v3277_v22, %v3134_v24 }
  0x3c   : > { %v710_v43 = vsel %vm662_vm5, %v705_v32, %v709_v62  ;;  %v752_v47 = vrot.slane %v750_v35, 1  ;;  %v303_v48 = vsel %vm3065_vm0, %v3284_v31, %v3137_v25  ;;  %v327_v52 = vsel %vm3087_vm2, %v3120_v19, %v302_v42 }
  0x3d   : > { %813 = vrot.lane.b32.xlu2 %v710_v43, %s2991_s7  ;;  %v489_v18 = vor.u32 %v487_v29, %v486_v40  ;;  %v592_v54 = vshll.u32 %v567_v41, 16  ;;  %v328_v55 = vsel %vm3087_vm2, %v3131_v23, %v303_v48  ;;  %v355_v3 = vunpack.c.l.b16 %v327_v52 }
  0x3e   : > { %v753_v56 = vor.u32 %v752_v47, %v748_v33  ;;  %v439_v38 = vunpack.c.l.b16 %v328_v55  ;;  %v286_v58 = vsel %vm3065_vm0, %v3105_v13, %v3092_v9  ;;  %v879_v19 = vsel %vm855_vm4, %v877_v37, %v878_v20 }
  0x3f   : > { %v594_v59 = vrot.slane %v592_v54, 3  ;;  %v3315_v16 = vsel %vm3168_vm6, %v384_v27, %v489_v18  ;;  %v287_v23 = vsel %vm3065_vm0, %v3108_v14, %v3102_v12  ;;  %v311_v9 = vsel %vm3087_vm2, %v3105_v13, %v286_v58 }
  0x40   : > { %v758_v17 = vsel %vm662_vm5, %v753_v56, %v757_v36  ;;  %v712_v60 = vshrl.u32 %v3315_v16, 16  ;;  %v714_v61 = vshll.u32 %v3315_v16, 16  ;;  %v367_v4 = vpack.c.b16 %v355_v3, %v355_v3 }
  0x41   : > { %821 = vrot.lane.b32.xlu1 %v758_v17, %s2991_s7  ;;  %v654_v62 = vsel %vm3168_vm6, %v486_v40, %v594_v59  ;;  %v451_v63 = vpack.c.b16 %v439_v38, %v355_v3  ;;  %v571_v2 = vpack.c.b16 %v439_v38, %v439_v38  ;;  %v746_v12 = vsel %vm662_vm5, %v741_v53, %v3256_v46 }
  0x42   : > { %906 = vrot.lane.b32.xlu0 %v879_v19, %s2990_s6  ;;  %v716_v7 = vrot.slane %v714_v61, 1  ;;  %v719_v10 = vshll.u32 %v654_v62, 16  ;;  %v868_v11 = vrot.slane %v3315_v16, 1  ;;  %v312_v27 = vsel %vm3087_vm2, %v3108_v14, %v287_v23 }
  0x43   : > { %v512_v15 = vshrl.u32 %v451_v63, 16  ;;  %v515_v20 = vshll.u32 %v451_v63, 16  ;;  %v608_v13 = vshll.u32 %v571_v2, 16  ;;  %v869_v32 = vrot.slane %v654_v62, 1 }
  0x44   : > { %v717_v28 = vor.u32 %v716_v7, %v712_v60  ;;  %v721_v29 = vrot.slane %v719_v10, 1  ;;  %v347_v33 = vunpack.c.l.b16 %v311_v9  ;;  %v396_v35 = vshrl.u32 %v367_v4, 16 }
  0x45   : > { %819 = vrot.lane.b32.xlu2 %v746_v12, %s2991_s7  ;;  %v514_v36 = vrot.slane %v512_v15, 7  ;;  %v610_v46 = vrot.slane %v608_v13, 3  ;;  %v431_v37 = vunpack.c.l.b16 %v312_v27  ;;  %v870_v52 = vsel %vm855_vm4, %v868_v11, %v869_v32 }
  0x46   : > { %v722_v40 = vsel %vm662_vm5, %v717_v28, %v721_v29  ;;  %v359_v41 = vpack.c.b16 %v347_v33, %v347_v33  ;;  %v296_v11 = vsel %vm3065_vm0, %v3197_v39, %v3150_v30  ;;  %v297_v15 = vsel %vm3065_vm0, %v3215_v49, %v3182_v21  ;;  %v3382_v21 = vld [vmem:[%s3069_s5 + $0x58] sm:$0xf] }
  0x47   : > { %v517_v42 = vor.u32 %v515_v20, %v514_v36  ;;  %v658_v43 = vsel %vm3168_vm6, %v514_v36, %v610_v46  ;;  %v443_v47 = vpack.c.b16 %v431_v37, %v347_v33  ;;  %v563_v48 = vpack.c.b16 %v431_v37, %v431_v37 }
  0x48   : > { %v767_v14 = vshll.u32 %v658_v43, 16  ;;  %v881_v58 = vrot.slane %v658_v43, 1  ;;  %v372_v19 = vshrl.u32 %v359_v41, 16  ;;  %v321_v20 = vsel %vm3087_vm2, %v3078_v5, %v296_v11  ;;  %v3385_v41 = vld [vmem:[%s3069_s5 + $0x5c] sm:$0xf] }
  0x49   : > { %815 = vrot.lane.b32.xlu1 %v722_v40, %s2991_s7  ;;  %v3345_v53 = vsel %vm3168_vm6, %v396_v35, %v517_v42  ;;  %v456_v18 = vshrl.u32 %v443_v47, 16  ;;  %v459_v54 = vshll.u32 %v443_v47, 16  ;;  %v576_v55 = vshll.u32 %v563_v48, 16 }
  0x4a   : > { %v760_v56 = vshrl.u32 %v3345_v53, 16  ;;  %v762_v3 = vshll.u32 %v3345_v53, 16  ;;  %v880_v38 = vrot.slane %v3345_v53, 1  ;;  %v769_v60 = vrot.slane %v767_v14, 1 }
  0x4b   : > { %v458_v59 = vrot.slane %v456_v18, 7  ;;  %v578_v23 = vrot.slane %v576_v55, 3  ;;  %v322_v13 = vsel %vm3087_vm2, %v3081_v6, %v297_v15  ;;  %v352_v27 = vunpack.c.l.b16 %v321_v20 }
  0x4c   : > { %v764_v17 = vrot.slane %v762_v3, 1  ;;  %v882_v62 = vsel %vm855_vm4, %v880_v38, %v881_v58  ;;  %v436_v28 = vunpack.c.l.b16 %v322_v13  ;;  %v304_v6 = vsel %vm3065_vm0, %v3382_v21, %v3202_v44 }
  0x4d   : > { %900 = vrot.lane.b32.xlu2 %v870_v52, %s2990_s6  ;;  %v461_v61 = vor.u32 %v459_v54, %v458_v59  ;;  %v3358_v63 = vsel %vm3168_vm6, %v458_v59, %v578_v23  ;;  %v364_v33 = vpack.c.b16 %v352_v27, %v352_v27  ;;  %v305_v43 = vsel %vm3065_vm0, %v3385_v41, %v3218_v50 }
  0x4e   : > { %v765_v9 = vor.u32 %v764_v17, %v760_v56  ;;  %v857_v7 = vrot.slane %v3358_v63, 1  ;;  %v448_v29 = vpack.c.b16 %v436_v28, %v352_v27  ;;  %v568_v36 = vpack.c.b16 %v436_v28, %v436_v28 }
  0x4f   : > { %v3354_v4 = vsel %vm3168_vm6, %v372_v19, %v461_v61  ;;  %v387_v46 = vshrl.u32 %v364_v33, 16  ;;  %v329_v14 = vsel %vm3087_vm2, %v3197_v39, %v304_v6  ;;  %v330_v52 = vsel %vm3087_vm2, %v3215_v49, %v305_v43 }
  0x50   : > { %v770_v2 = vsel %vm662_vm5, %v765_v9, %v769_v60  ;;  %v856_v12 = vrot.slane %v3354_v4, 1  ;;  %v491_v32 = vshrl.u32 %v448_v29, 16  ;;  %v494_v35 = vshll.u32 %v448_v29, 16 }
  0x51   : > { %823 = vrot.lane.b32.xlu0 %v770_v2, %s2991_s7  ;;  %908 = vrot.lane.b32.xlu1 %v882_v62, %s2990_s6  ;;  %v596_v40 = vshll.u32 %v568_v36, 16  ;;  %v356_v54 = vunpack.c.l.b16 %v329_v14  ;;  %v440_v55 = vunpack.c.l.b16 %v330_v52  ;;  %v666_v20 = vshll.u32 %v3354_v4, 16 }
  0x52   : > { %v858_v10 = vsel %vm855_vm4, %v856_v12, %v857_v7  ;;  %v493_v30 = vrot.slane %v491_v32, 7  ;;  %v331_v13 = vsel %vm3087_vm2, %v3134_v24, %v3277_v22  ;;  %v332_v27 = vsel %vm3087_vm2, %v3137_v25, %v3284_v31 }
  0x53   : > { %v598_v5 = vrot.slane %v596_v40, 3  ;;  %v452_v38 = vpack.c.b16 %v440_v55, %v356_v54  ;;  %v572_v23 = vpack.c.b16 %v440_v55, %v440_v55  ;;  %v368_v17 = vpack.c.b16 %v356_v54, %v356_v54 }
  0x54   : > { %v496_v37 = vor.u32 %v494_v35, %v493_v30  ;;  %v664_v28 = vshrl.u32 %v3354_v4, 16  ;;  %v668_v29 = vrot.slane %v666_v20, 1  ;;  %v671_v32 = vshll.u32 %v3358_v63, 16 }
  0x55   : > { %v3409_v18 = vsel %vm3168_vm6, %v493_v30, %v598_v5  ;;  %v519_v59 = vshrl.u32 %v452_v38, 16  ;;  %v522_v60 = vshll.u32 %v452_v38, 16  ;;  %v612_v61 = vshll.u32 %v572_v23, 16 }
  0x56   : > { %v3389_v42 = vsel %vm3168_vm6, %v387_v46, %v496_v37  ;;  %v731_v3 = vshll.u32 %v3409_v18, 16  ;;  %v399_v9 = vshrl.u32 %v368_v17, 16  ;;  %v357_v33 = vunpack.c.l.b16 %v331_v13 }
  0x57   : > { %v724_v47 = vshrl.u32 %v3389_v42, 16  ;;  %v726_v48 = vshll.u32 %v3389_v42, 16  ;;  %v521_v49 = vrot.slane %v519_v59, 7  ;;  %v614_v2 = vrot.slane %v612_v61, 3 }
  0x58   : > { %v733_v19 = vrot.slane %v731_v3, 1  ;;  %v441_v30 = vunpack.c.l.b16 %v332_v27  ;;  %v669_v35 = vor.u32 %v668_v29, %v664_v28  ;;  %v673_v36 = vrot.slane %v671_v32, 1 }
  0x59   : > { %892 = vrot.lane.b32.xlu0 %v858_v10, %s2990_s6  ;;  %v728_v56 = vrot.slane %v726_v48, 1  ;;  %v524_v62 = vor.u32 %v522_v60, %v521_v49  ;;  %v3420_v7 = vsel %vm3168_vm6, %v521_v49, %v614_v2  ;;  %v369_v22 = vpack.c.b16 %v357_v33, %v357_v33 }
  0x5a   : > { %v884_v11 = vrot.slane %v3420_v7, 1  ;;  %v453_v46 = vpack.c.b16 %v441_v30, %v357_v33  ;;  %v674_v37 = vsel %vm662_vm5, %v669_v35, %v673_v36  ;;  %v573_v40 = vpack.c.b16 %v441_v30, %v441_v30 }
  0x5b   : > { %v729_v58 = vor.u32 %v728_v56, %v724_v47  ;;  %v3416_v12 = vsel %vm3168_vm6, %v399_v9, %v524_v62  ;;  %807 = vrot.lane.b32.xlu2 %v674_v37, %s2991_s7  ;;  %v402_v31 = vshrl.u32 %v369_v22, 16  ;;  %v306_v52 = vsel %vm3065_vm0, %v3202_v44, %v3382_v21 }
  0x5c   : > { %v883_v10 = vrot.slane %v3416_v12, 1  ;;  %v526_v24 = vshrl.u32 %v453_v46, 16  ;;  %v529_v5 = vshll.u32 %v453_v46, 16  ;;  %v616_v6 = vshll.u32 %v573_v40, 16 }
  0x5d   : > { %v734_v39 = vsel %vm662_vm5, %v729_v58, %v733_v19  ;;  %v307_v54 = vsel %vm3065_vm0, %v3218_v50, %v3385_v41  ;;  %v333_v55 = vsel %vm3087_vm2, %v3202_v44, %v306_v52  ;;  %v871_v20 = vrot.slane %v3389_v42, 1 }
  0x5e   : > { %v885_v15 = vsel %vm855_vm4, %v883_v10, %v884_v11  ;;  %v528_v25 = vrot.slane %v526_v24, 7  ;;  %v618_v43 = vrot.slane %v616_v6, 3  ;;  %v334_v56 = vsel %vm3087_vm2, %v3218_v50, %v307_v54 }
  0x5f   : > { %v358_v3 = vunpack.c.l.b16 %v333_v55  ;;  %v442_v38 = vunpack.c.l.b16 %v334_v56  ;;  %v872_v13 = vrot.slane %v3409_v18, 1  ;;  %v772_v30 = vshrl.u32 %v3416_v12, 16 }
  0x60   : > { %v531_v47 = vor.u32 %v529_v5, %v528_v25  ;;  %v3441_v63 = vsel %vm3168_vm6, %v528_v25, %v618_v43  ;;  %v779_v18 = vshll.u32 %v3420_v7, 16 }
  0x61   : > { %817 = vrot.lane.b32.xlu0 %v734_v39, %s2991_s7  ;;  %v454_v58 = vpack.c.b16 %v442_v38, %v358_v3  ;;  %v574_v59 = vpack.c.b16 %v442_v38, %v442_v38  ;;  %v370_v21 = vpack.c.b16 %v358_v3, %v358_v3  ;;  %v887_v32 = vrot.slane %v3441_v63, 1 }
  0x62   : > { %v3445_v48 = vsel %vm3168_vm6, %v402_v31, %v531_v47  ;;  %v781_v24 = vrot.slane %v779_v18, 1  ;;  %v791_v52 = vshll.u32 %v3441_v63, 16 }
  0x63   : > { %v533_v19 = vshrl.u32 %v454_v58, 16  ;;  %v536_v17 = vshll.u32 %v454_v58, 16  ;;  %v620_v60 = vshll.u32 %v574_v59, 16  ;;  %v405_v41 = vshrl.u32 %v370_v21, 16 }
  0x64   : > { %v886_v29 = vrot.slane %v3445_v48, 1  ;;  %v784_v25 = vshrl.u32 %v3445_v48, 16  ;;  %v793_v56 = vrot.slane %v791_v52, 1 }
  0x65   : > { %v535_v39 = vrot.slane %v533_v19, 7  ;;  %v622_v44 = vrot.slane %v620_v60, 3 }
  0x66   : > { %v888_v37 = vsel %vm855_vm4, %v886_v29, %v887_v32 }
  0x67   : > { %v538_v61 = vor.u32 %v536_v17, %v535_v39  ;;  %v3469_v2 = vsel %vm3168_vm6, %v535_v39, %v622_v44 }
  0x69   : > { %910 = vrot.lane.b32.xlu0 %v885_v15, %s2990_s6  ;;  %v3463_v50 = vsel %vm3168_vm6, %v405_v41, %v538_v61  ;;  %v803_v41 = vshll.u32 %v3469_v2, 16 }
  0x6a   : > { %v798_v58 = vshll.u32 %v3463_v50, 16  ;;  %v796_v39 = vshrl.u32 %v3463_v50, 16 }
  0x6c   : > { %v800_v60 = vrot.slane %v798_v58, 1 }
  0x86   : > { %v905_v14 = vpop.permute.xlu2 %904 }
  0x97   : > { %v814_v23 = vpop.permute.xlu2 %813 }
  0x98   : > { %v895_v49 = vpop.permute.xlu1 %894  ;;  %v924_v5 = vsel %vm916_vm7, %v3268_v57, %v814_v23  ;;  %v889_v57 = vrot.slane %v3463_v50, 1 }
  0x9c   : > { %v810_v9 = vpop.permute.xlu0 %809 }
  0x9d   : > { %v920_v62 = vsel %vm916_vm7, %v3176_v0, %v810_v9  ;;  %v774_v0 = vshll.u32 %v3416_v12, 16  ;;  %v1063_v9 = vld [vmem:[%s4087_s1 + $0x10] sm:$0x3] }
  0x9e   : > { %v3472_v10 = vsel %vm941_vm8, %v920_v62, %v895_v49  ;;  %v1073_v62 = vunpack.c.l.b16 %v1063_v9 }
  0x9f   : > { %v820_v11 = vpop.permute.xlu2 %819  ;;  %976 = vrot.lane.b32.xlu1 %v3472_v10, %s2992_s8  ;;  %v776_v35 = vrot.slane %v774_v0, 1 }
  0xa0   : > { %v930_v15 = vsel %vm916_vm7, %v3206_v45, %v820_v11  ;;  %v897_v28 = vpop.permute.xlu1 %896  ;;  %v873_v45 = vsel %vm855_vm4, %v871_v20, %v872_v13  ;;  %v2815_v20 = vld [vmem:[%s4087_s1] sm:$0xff] }
  0xa1   : > { %v3482_v27 = vsel %vm941_vm8, %v930_v15, %v905_v14  ;;  %v777_v40 = vor.u32 %v776_v35, %v772_v30  ;;  %v2816_v15 = vld [vmem:[%s4087_s1 + $0x8] sm:$0xff] }
  0xa2   : > { %986 = vrot.lane.b32.xlu0 %v3482_v27, %s2992_s8 }
  0xa3   : > { %v782_v7 = vsel %vm662_vm5, %v777_v40, %v781_v24 }
  0xa4   : > { %v812_v33 = vpop.permute.xlu0 %811 }
  0xa5   : > { %v922_v36 = vsel %vm916_vm7, %v3190_v34, %v812_v33  ;;  %v786_v34 = vshll.u32 %v3445_v48, 16 }
  0xa6   : > { %v3494_v46 = vsel %vm941_vm8, %v922_v36, %v897_v28 }
  0xa7   : > { %902 = vrot.lane.b32.xlu1 %v873_v45, %s2990_s6  ;;  %997 = vrot.lane.b32.xlu2 %v3494_v46, %s2993_s9  ;;  %v788_v14 = vrot.slane %v786_v34, 1  ;;  %v901_v59 = vpop.permute.xlu2 %900 }
  0xa9   : > { %v789_v55 = vor.u32 %v788_v14, %v784_v25 }
  0xaa   : > { %912 = vrot.lane.b32.xlu0 %v888_v37, %s2990_s6 }
  0xab   : > { %v794_v38 = vsel %vm662_vm5, %v789_v55, %v793_v56 }
  0xac   : > { %v899_v22 = vpop.permute.xlu0 %898 }
  0xad   : > { %v3512_v47 = vsel %vm941_vm8, %v924_v5, %v899_v22 }
  0xaf   : > { %978 = vrot.lane.b32.xlu1 %v3494_v46, %s2992_s8  ;;  %825 = vrot.lane.b32.xlu2 %v782_v7, %s2991_s7 }
  0xb3   : > { %v822_v6 = vpop.permute.xlu1 %821 }
  0xb4   : > { %v932_v31 = vsel %vm916_vm7, %v3281_v26, %v822_v6  ;;  %v907_v43 = vpop.permute.xlu0 %906  ;;  %v890_v26 = vrot.slane %v3469_v2, 1  ;;  %v1076_v2 = vpack.c.b16 %v1073_v62, %v1073_v62 }
  0xb5   : > { %v3516_v54 = vsel %vm941_vm8, %v932_v31, %v907_v43  ;;  %v808_v0 = vpop.permute.xlu2 %807 }
  0xb6   : > { %988 = vrot.lane.b32.xlu0 %v3516_v54, %s2992_s8  ;;  %v891_v63 = vsel %vm855_vm4, %v889_v57, %v890_v26  ;;  %v1102_v11 = vsel %vm1100_vm9, %v1076_v2, 0  ;;  %v918_v35 = vsel %vm916_vm7, %v3354_v4, %v808_v0 }
  0xb7   : > { %1007 = vrot.lane.b32.xlu1 %v3516_v54, %s2993_s9  ;;  %999 = vrot.lane.b32.xlu2 %v3512_v47, %s2993_s9 }
  0xb8   : > { %1109 = vmatpush.bf16.msra.mxu0 %v1102_v11  ;;  %2821 = vmatpush.bf16.msra.mxu2 %v1102_v11 }
  0xbb   : > { %v816_v3 = vpop.permute.xlu1 %815 }
  0xbc   : > { %v926_v19 = vsel %vm916_vm7, %v3315_v16, %v816_v3  ;;  %v801_v16 = vor.u32 %v800_v60, %v796_v39  ;;  %1110 = vmatpush.bf16.msra.mxu0 %v2816_v15  ;;  %2822 = vmatpush.bf16.msra.mxu2 %v2816_v15 }
  0xbd   : > { %v3539_v49 = vsel %vm941_vm8, %v926_v19, %v901_v59 }
  0xbe   : > { %914 = vrot.lane.b32.xlu0 %v891_v63, %s2990_s6 }
  0xbf   : > { %980 = vrot.lane.b32.xlu1 %v3512_v47, %s2992_s8  ;;  %827 = vrot.lane.b32.xlu2 %v794_v38, %s2991_s7 }
  0xc0   : > { %1111 = vmatpush.bf16.msra.mxu0 %v2815_v20  ;;  %2823 = vmatpush.bf16.msra.mxu2 %v2815_v20 }
  0xc3   : > { %v824_v23 = vpop.permute.xlu0 %823  ;;  %v909_v21 = vpop.permute.xlu1 %908 }
  0xc4   : > { %v934_v17 = vsel %vm916_vm7, %v3345_v53, %v824_v23  ;;  %v805_v53 = vrot.slane %v803_v41, 1 }
  0xc5   : > { %v3543_v61 = vsel %vm941_vm8, %v934_v17, %v909_v21 }
  0xc6   : > { %990 = vrot.lane.b32.xlu0 %v3543_v61, %s2992_s8  ;;  %v806_v44 = vsel %vm662_vm5, %v801_v16, %v805_v53 }
  0xc7   : > { %1009 = vrot.lane.b32.xlu1 %v3543_v61, %s2993_s9  ;;  %1001 = vrot.lane.b32.xlu2 %v3539_v49, %s2993_s9 }
  0xcb   : > { %v893_v13 = vpop.permute.xlu0 %892 }
  0xcc   : > { %v943_v18 = vsel %vm941_vm8, %v918_v35, %v893_v13 }
  0xce   : > { %1005 = vrot.lane.b32.xlu0 %v3482_v27, %s2993_s9 }
  0xcf   : > { %982 = vrot.lane.b32.xlu1 %v3539_v49, %s2992_s8  ;;  %829 = vrot.lane.b32.xlu2 %v806_v44, %s2991_s7 }
  0xd3   : > { %v818_v28 = vpop.permute.xlu0 %817 }
  0xd4   : > { %v928_v4 = vsel %vm916_vm7, %v3389_v42, %v818_v28 }
  0xdb   : > { %v911_v32 = vpop.permute.xlu0 %910 }
 0x101   : > { %v998_v29 = vpop.permute.xlu2 %997 }
 0x109   : > { %v826_v33 = vpop.permute.xlu2 %825 }
 0x10a   : > { %v936_v45 = vsel %vm916_vm7, %v3416_v12, %v826_v33 }
 0x10b   : > { %v3569_v30 = vsel %vm941_vm8, %v936_v45, %v911_v32 }
 0x10c   : > { %1011 = vrot.lane.b32.xlu1 %v3569_v30, %s2993_s9 }
 0x111   : > { %v977_v36 = vpop.permute.xlu1 %976  ;;  %v1000_v37 = vpop.permute.xlu2 %999 }
 0x112   : > { %v1019_v40 = vsel %vm1017_vm10, %v943_v18, %v977_v36 }
 0x113   : > { %v1040_v12 = vsel %vm1038_vm11, %v1019_v40, %v998_v29 }
 0x114   : > { %v987_v24 = vpop.permute.xlu0 %986  ;;  %2708 = vmatmul.msk.bf16.vlgmr.msra.gmra.mxu0 %vm1079_vm12, %v1040_v12  ;;  %992 = vrot.lane.b32.xlu1 %v3569_v30, %s2992_s8 }
 0x119   : > { %v903_v22 = vpop.permute.xlu1 %902  ;;  %v828_v7 = vpop.permute.xlu2 %827 }
 0x11a   : > { %v938_v34 = vsel %vm916_vm7, %v3445_v48, %v828_v7  ;;  %v953_v5 = vsel %vm941_vm8, %v928_v4, %v903_v22 }
 0x11b   : > { %1003 = vrot.lane.b32.xlu2 %v953_v5, %s2993_s9  ;;  %v1029_v57 = vsel %vm1017_vm10, %v953_v5, %v987_v24 }
 0x11c   : > { %v913_v6 = vpop.permute.xlu0 %912 }
 0x11d   : > { %v963_v25 = vsel %vm941_vm8, %v938_v34, %v913_v6 }
 0x11e   : > { %994 = vrot.lane.b32.xlu0 %v963_v25, %s2992_s8 }
 0x121   : > { %v979_v31 = vpop.permute.xlu1 %978  ;;  %v1002_v43 = vpop.permute.xlu2 %1001 }
 0x122   : > { %v1021_v14 = vsel %vm1017_vm10, %v3472_v10, %v979_v31 }
 0x123   : > { %984 = vrot.lane.b32.xlu2 %v953_v5, %s2992_s8  ;;  %v1042_v42 = vsel %vm1038_vm11, %v1021_v14, %v1000_v37 }
 0x124   : > { %2709 = vmatmul.msk.bf16.gmra.mxu0 %vm1079_vm12, %v1042_v42 }
 0x128   : > { %v989_v48 = vpop.permute.xlu0 %988 }
 0x129   : > { %v1008_v52 = vpop.permute.xlu1 %1007  ;;  %v830_v55 = vpop.permute.xlu2 %829  ;;  %v1031_v19 = vsel %vm1017_vm10, %v3482_v27, %v989_v48 }
 0x12a   : > { %v1050_v26 = vsel %vm1038_vm11, %v1029_v57, %v1008_v52  ;;  %v940_v10 = vsel %vm916_vm7, %v3463_v50, %v830_v55 }
 0x12b   : > { %2713 = vmatmul.msk.bf16.vlgmr.msra.gmra.mxu2 %vm1079_vm12, %v1050_v26  ;;  %1013 = vrot.lane.b32.xlu2 %v963_v25, %s2993_s9 }
 0x130   : > { %v915_v56 = vpop.permute.xlu0 %914 }
 0x131   : > { %v981_v3 = vpop.permute.xlu1 %980  ;;  %v965_v63 = vsel %vm941_vm8, %v940_v10, %v915_v56 }
 0x132   : > { %v1023_v38 = vsel %vm1017_vm10, %v3494_v46, %v981_v3  ;;  %1015 = vrot.lane.b32.xlu1 %v965_v63, %s2993_s9 }
 0x133   : > { %v1044_v58 = vsel %vm1038_vm11, %v1023_v38, %v1002_v43 }
 0x134   : > { %2710 = vmatmul.msk.bf16.gmra.mxu0 %vm1079_vm12, %v1044_v58 }
 0x138   : > { %v991_v17 = vpop.permute.xlu0 %990 }
 0x139   : > { %v1010_v59 = vpop.permute.xlu1 %1009  ;;  %v1033_v60 = vsel %vm1017_vm10, %v3516_v54, %v991_v17 }
 0x13a   : > { %v1052_v23 = vsel %vm1038_vm11, %v1031_v19, %v1010_v59 }
 0x13b   : > { %2714 = vmatmul.msk.bf16.gmra.mxu2 %vm1079_vm12, %v1052_v23 }
 0x140   : > { %v1006_v44 = vpop.permute.xlu0 %1005 }
 0x141   : > { %v983_v50 = vpop.permute.xlu1 %982 }
 0x142   : > { %v1025_v21 = vsel %vm1017_vm10, %v3512_v47, %v983_v50 }
 0x175   : > { %v1004_v39 = vpop.permute.xlu2 %1003 }
 0x176   : > { %v1046_v46 = vsel %vm1038_vm11, %v1025_v21, %v1004_v39 }
 0x177   : > { %2711 = vmatmul.msk.bf16.gmra.mxu0 %vm1079_vm12, %v1046_v46 }
 0x17d   : > { %v985_v16 = vpop.permute.xlu2 %984 }
 0x17e   : > { %v1012_v41 = vpop.permute.xlu1 %1011  ;;  %v1027_v53 = vsel %vm1017_vm10, %v3539_v49, %v985_v16 }
 0x17f   : > { %v1054_v27 = vsel %vm1038_vm11, %v1033_v60, %v1012_v41  ;;  %v1048_v47 = vsel %vm1038_vm11, %v1027_v53, %v1006_v44 }
 0x180   : > { %2715 = vmatmul.msk.bf16.gmra.mxu2 %vm1079_vm12, %v1054_v27 }
 0x185   : > { %v1014_v2 = vpop.permute.xlu2 %1013 }
 0x186   : > { %v993_v9 = vpop.permute.xlu1 %992 }
 0x187   : > { %2712 = vmatmul.msk.bf16.gmra.mxu0 %vm1079_vm12, %v1048_v47  ;;  %v1035_v62 = vsel %vm1017_vm10, %v3543_v61, %v993_v9 }
 0x188   : > { %v1056_v54 = vsel %vm1038_vm11, %v1035_v62, %v1014_v2 }
 0x190   : > { %2716 = vmatmul.msk.bf16.gmra.mxu2 %vm1079_vm12, %v1056_v54  ;;  %v995_v20 = vpop.permute.xlu0 %994 }
 0x191   : > { %v1113_v11 = vpop.f32.mrf.mxu0  ;;  %v1037_v0 = vsel %vm1017_vm10, %v3569_v30, %v995_v20 }
 0x192   : > { %v1183_v29 = vmul.f32 1.442695, %v1113_v11  ;;  %vm1163_vm15 = vcmp.gt.f32.partialorder %v1113_v11, 0.0 }
 0x199   : > { %v3626_v15 = vpop.f32.mrf.mxu0 }
 0x19a   : > { %v1185_v45 = vmul.f32 1.442695, %v3626_v15  ;;  %vm1164_vm3 = vcmp.gt.f32.partialorder %v3626_v15, 0.0 }
 0x1a1   : > { %v1118_v13 = vpop.f32.mrf.mxu0 }
 0x1a2   : > { %v1187_v49 = vmul.f32 1.442695, %v1118_v13  ;;  %vm1165_vm13 = vcmp.gt.f32.partialorder %v1118_v13, 0.0 }
 0x1a4   : > { %2878 = vpow2.f32 %v1187_v49  ;;  %v1016_v28 = vpop.permute.xlu1 %1015 }
 0x1a5   : > { %v1058_v32 = vsel %vm1038_vm11, %v1037_v0, %v1016_v28  ;;  %2880 = vpow2.f32 %v1183_v29 }
 0x1a6   : > { %2717 = vmatmul.msk.bf16.gmra.mxu2 %vm1079_vm12, %v1058_v32 }
 0x1a9   : > { %v1120_v61 = vpop.f32.mrf.mxu0 }
 0x1aa   : > { %v2879_v33 = vpop.eup %2878  ;;  %v1189_v35 = vmul.f32 1.442695, %v1120_v61  ;;  %vm1166_vm14 = vcmp.gt.f32.partialorder %v1120_v61, 0.0 }
 0x1ab   : > { %v2720_v18 = vadd.f32 -1.0, %v2879_v33  ;;  %v2881_v40 = vpop.eup %2880 }
 0x1ac   : > { %2882 = vpow2.f32 %v1189_v35  ;;  %v2718_v22 = vadd.f32 -1.0, %v2881_v40 }
 0x1ad   : > { %v1245_v36 = vmul.f32 1.6732632, %v2720_v18  ;;  %2884 = vpow2.f32 %v1185_v45 }
 0x1ae   : > { %v1138_v37 = vpop.f32.mrf.mxu2  ;;  %v1243_v31 = vmul.f32 1.6732632, %v2718_v22 }
 0x1af   : > { %v1203_v30 = vmul.f32 1.442695, %v1138_v37  ;;  %v1265_v12 = vsel %vm1165_vm13, %v1118_v13, %v1245_v36  ;;  %vm1173_vm1 = vcmp.gt.f32.partialorder %v1138_v37, 0.0 }
 0x1b0   : > { %v1285_v6 = vmul.f32 1.050701, %v1265_v12  ;;  %v1263_v3 = vsel %vm1163_vm15, %v1113_v11, %v1243_v31 }
 0x1b1   : > { %2886 = vpow2.f32 %v1203_v30  ;;  %v1123_v24 = vpop.f32.mrf.mxu0  ;;  %v1283_v39 = vmul.f32 1.050701, %v1263_v3 }
 0x1b2   : > { %v2883_v4 = vpop.eup %2882  ;;  %v1191_v7 = vmul.f32 1.442695, %v1123_v24  ;;  %v1305_v57 = vpack.c.bf16 %v1285_v6, %v1285_v6  ;;  %vm1167_vm7 = vcmp.gt.f32.partialorder %v1123_v24, 0.0 }
 0x1b3   : > { %v2721_v34 = vadd.f32 -1.0, %v2883_v4  ;;  %v2885_v5 = vpop.eup %2884  ;;  %v1303_v20 = vpack.c.bf16 %v1283_v39, %v1283_v39 }
 0x1b4   : > { %2888 = vpow2.f32 %v1191_v7  ;;  %v2719_v42 = vadd.f32 -1.0, %v2885_v5  ;;  %v1340_v23 = vunpack.c.l.b16 %v1305_v57 }
 0x1b5   : > { %v1246_v25 = vmul.f32 1.6732632, %v2721_v34 }
 0x1b6   : > { %v1140_v43 = vpop.f32.mrf.mxu2  ;;  %v1244_v19 = vmul.f32 1.6732632, %v2719_v42  ;;  %v1350_v62 = vpack.c.b16 %v1340_v23, %v1340_v23 }
 0x1b7   : > { %v2887_v14 = vpop.eup %2886  ;;  %v1266_v48 = vsel %vm1166_vm14, %v1120_v61, %v1246_v25  ;;  %v1205_v52 = vmul.f32 1.442695, %v1140_v43  ;;  %vm1174_vm9 = vcmp.gt.f32.partialorder %v1140_v43, 0.0 }
 0x1b8   : > { %v1286_v26 = vmul.f32 1.050701, %v1266_v48  ;;  %v2728_v55 = vadd.f32 -1.0, %v2887_v14  ;;  %v1264_v53 = vsel %vm1164_vm3, %v3626_v15, %v1244_v19  ;;  %v1363_v35 = vshrl.u32 %v1350_v62, 16 }
 0x1b9   : > { %2890 = vpow2.f32 %v1205_v52  ;;  %v1125_v10 = vpop.f32.mrf.mxu0  ;;  %v1284_v61 = vmul.f32 1.050701, %v1264_v53 }
 0x1ba   : > { %v2889_v56 = vpop.eup %2888  ;;  %v1306_v63 = vpack.c.bf16 %v1286_v26, %v1286_v26  ;;  %v1253_v38 = vmul.f32 1.6732632, %v2728_v55  ;;  %v1193_v58 = vmul.f32 1.442695, %v1125_v10  ;;  %vm1168_vm10 = vcmp.gt.f32.partialorder %v1125_v10, 0.0 }
 0x1bb   : > { %v2722_v59 = vadd.f32 -1.0, %v2889_v56  ;;  %v1304_v34 = vpack.c.bf16 %v1284_v61, %v1284_v61 }
 0x1bc   : > { %v1410_v50 = vunpack.c.l.b16 %v1306_v63  ;;  %v1273_v21 = vsel %vm1173_vm1, %v1138_v37, %v1253_v38  ;;  %2892 = vpow2.f32 %v1193_v58 }
 0x1bd   : > { %v1293_v46 = vmul.f32 1.050701, %v1273_v21  ;;  %v1247_v17 = vmul.f32 1.6732632, %v2722_v59 }
 0x1be   : > { %v1420_v60 = vpack.c.b16 %v1410_v50, %v1340_v23  ;;  %v1520_v41 = vpack.c.b16 %v1410_v50, %v1410_v50  ;;  %v3634_v27 = vpop.f32.mrf.mxu2 }
 0x1bf   : > { %v2891_v16 = vpop.eup %2890  ;;  %v1313_v44 = vpack.c.bf16 %v1293_v46, %v1293_v46  ;;  %v1267_v47 = vsel %vm1167_vm7, %v1123_v24, %v1247_v17  ;;  %v1207_v9 = vmul.f32 1.442695, %v3634_v27  ;;  %vm1175_vm12 = vcmp.gt.f32.partialorder %v3634_v27, 0.0 }
 0x1c0   : > { %v1437_v2 = vshrl.u32 %v1420_v60, 16  ;;  %v1534_v54 = vshll.u32 %v1520_v41, 16  ;;  %v1287_v11 = vmul.f32 1.050701, %v1267_v47  ;;  %v2729_v13 = vadd.f32 -1.0, %v2891_v16 }
 0x1c1   : > { %2894 = vpow2.f32 %v1207_v9  ;;  %v1440_v28 = vshll.u32 %v1420_v60, 16  ;;  %v1344_v33 = vunpack.c.l.b16 %v1313_v44 }
 0x1c2   : > { %v2893_v49 = vpop.eup %2892  ;;  %v1439_v0 = vrot.slane %v1437_v2, 7  ;;  %v1536_v29 = vrot.slane %v1534_v54, 3  ;;  %v1307_v32 = vpack.c.bf16 %v1287_v11, %v1287_v11  ;;  %v1254_v45 = vmul.f32 1.6732632, %v2729_v13 }
 0x1c3   : > { %v2723_v15 = vadd.f32 -1.0, %v2893_v49  ;;  %v1354_v5 = vpack.c.b16 %v1344_v33, %v1344_v33 }
 0x1c4   : > { %v1442_v18 = vor.u32 %v1440_v28, %v1439_v0  ;;  %v1325_v36 = vsel %vm3087_vm2, %v1307_v32, %v1303_v20  ;;  %v1341_v37 = vunpack.c.l.b16 %v1307_v32  ;;  %v1274_v40 = vsel %vm1174_vm9, %v1140_v43, %v1254_v45 }
 0x1c5   : > { %v1248_v30 = vmul.f32 1.6732632, %v2723_v15  ;;  %v1294_v12 = vmul.f32 1.050701, %v1274_v40  ;;  %v1590_v22 = vsel %vm3168_vm6, %v1439_v0, %v1536_v29  ;;  %v1339_v31 = vunpack.c.l.b16 %v1325_v36 }
 0x1c6   : > { %v3640_v24 = vpop.f32.mrf.mxu2  ;;  %v3644_v4 = vsel %vm3168_vm6, %v1363_v35, %v1442_v18  ;;  %v1351_v48 = vpack.c.b16 %v1341_v37, %v1341_v37  ;;  %v1763_v57 = vrot.slane %v1590_v22, 1  ;;  %v1375_v3 = vshrl.u32 %v1354_v5, 16 }
 0x1c7   : > { %v2895_v7 = vpop.eup %2894  ;;  %v1268_v6 = vsel %vm1168_vm10, %v1125_v10, %v1248_v30  ;;  %v1209_v25 = vmul.f32 1.442695, %v3640_v24  ;;  %v1314_v43 = vpack.c.bf16 %v1294_v12, %v1294_v12  ;;  %v1762_v52 = vrot.slane %v3644_v4, 1 }
 0x1c8   : > { %v1288_v14 = vmul.f32 1.050701, %v1268_v6  ;;  %v2730_v42 = vadd.f32 -1.0, %v2895_v7  ;;  %v1614_v56 = vshll.u32 %v3644_v4, 16  ;;  %v1619_v38 = vshll.u32 %v1590_v22, 16 }
 0x1c9   : > { %2896 = vpow2.f32 %v1209_v25  ;;  %v1414_v26 = vunpack.c.l.b16 %v1314_v43  ;;  %v1764_v10 = vsel %vm855_vm4, %v1762_v52, %v1763_v57  ;;  %v1349_v50 = vpack.c.b16 %v1339_v31, %v1339_v31 }
 0x1ca   : > { %v1308_v55 = vpack.c.bf16 %v1288_v14, %v1288_v14  ;;  %v1255_v63 = vmul.f32 1.6732632, %v2730_v42  ;;  %1791 = vrot.lane.b32.xlu1 %v1764_v10, %s2994_s24  ;;  %v1366_v21 = vshrl.u32 %v1351_v48, 16  ;;  %v1612_v46 = vshrl.u32 %v3644_v4, 16 }
 0x1cb   : > { %v1424_v58 = vpack.c.b16 %v1414_v26, %v1344_v33  ;;  %v1524_v19 = vpack.c.b16 %v1414_v26, %v1414_v26  ;;  %v1616_v16 = vrot.slane %v1614_v56, 1  ;;  %v1621_v20 = vrot.slane %v1619_v38, 1 }
 0x1cc   : > { %v1326_v59 = vsel %vm3087_vm2, %v1308_v55, %v1304_v34  ;;  %v1411_v23 = vunpack.c.l.b16 %v1308_v55  ;;  %v1275_v62 = vsel %vm1175_vm12, %v3634_v27, %v1255_v63  ;;  %vm1176_vm13 = vcmp.gt.f32.partialorder %v3640_v24, 0.0 }
 0x1cd   : > { %v1409_v39 = vunpack.c.l.b16 %v1326_v59  ;;  %v1465_v17 = vshrl.u32 %v1424_v58, 16  ;;  %v1550_v60 = vshll.u32 %v1524_v19, 16  ;;  %v1468_v54 = vshll.u32 %v1424_v58, 16 }
 0x1ce   : > { %v1421_v41 = vpack.c.b16 %v1411_v23, %v1341_v37  ;;  %v1521_v9 = vpack.c.b16 %v1411_v23, %v1411_v23  ;;  %v1617_v33 = vor.u32 %v1616_v16, %v1612_v46  ;;  %v1295_v35 = vmul.f32 1.050701, %v1275_v62 }
 0x1cf   : > { %v2897_v53 = vpop.eup %2896  ;;  %v1419_v44 = vpack.c.b16 %v1409_v39, %v1339_v31  ;;  %v1519_v47 = vpack.c.b16 %v1409_v39, %v1409_v39  ;;  %v1467_v2 = vrot.slane %v1465_v17, 7  ;;  %v1552_v13 = vrot.slane %v1550_v60, 3 }
 0x1d0   : > { %v1444_v11 = vshrl.u32 %v1421_v41, 16  ;;  %v1447_v49 = vshll.u32 %v1421_v41, 16  ;;  %v1538_v28 = vshll.u32 %v1521_v9, 16  ;;  %v2731_v61 = vadd.f32 -1.0, %v2897_v53 }
 0x1d1   : > { %v1530_v0 = vshll.u32 %v1519_v47, 16  ;;  %v1470_v29 = vor.u32 %v1468_v54, %v1467_v2  ;;  %v1430_v18 = vshrl.u32 %v1419_v44, 16  ;;  %v1622_v27 = vsel %vm662_vm5, %v1617_v33, %v1621_v20 }
 0x1d2   : > { %v1446_v32 = vrot.slane %v1444_v11, 7  ;;  %v1540_v15 = vrot.slane %v1538_v28, 3  ;;  %v1256_v37 = vmul.f32 1.6732632, %v2731_v61  ;;  %1721 = vrot.lane.b32.xlu2 %v1622_v27, %s2990_s6  ;;  %v3671_v22 = vsel %vm3168_vm6, %v1467_v2, %v1552_v13 }
 0x1d3   : > { %v1532_v45 = vrot.slane %v1530_v0, 3  ;;  %v3663_v40 = vsel %vm3168_vm6, %v1375_v3, %v1470_v29  ;;  %v1432_v12 = vrot.slane %v1430_v18, 7  ;;  %v1360_v7 = vshrl.u32 %v1349_v50, 16 }
 0x1d4   : > { %v1449_v36 = vor.u32 %v1447_v49, %v1446_v32  ;;  %v1591_v30 = vsel %vm3168_vm6, %v1446_v32, %v1540_v15  ;;  %v1433_v34 = vshll.u32 %v1419_v44, 16  ;;  %v1276_v5 = vsel %vm1176_vm13, %v3640_v24, %v1256_v37 }
 0x1d5   : > { %v1315_v25 = vpack.c.bf16 %v1295_v35, %v1295_v35  ;;  %v1296_v31 = vmul.f32 1.050701, %v1276_v5  ;;  %v1766_v14 = vrot.slane %v1591_v30, 1  ;;  %v1631_v48 = vshll.u32 %v1591_v30, 16 }
 0x1d6   : > { %v3676_v6 = vsel %vm3168_vm6, %v1366_v21, %v1449_v36  ;;  %v1435_v52 = vor.u32 %v1433_v34, %v1432_v12  ;;  %v3682_v57 = vsel %vm3168_vm6, %v1432_v12, %v1532_v45 }
 0x1d7   : > { %v1765_v43 = vrot.slane %v3676_v6, 1  ;;  %v1626_v42 = vshll.u32 %v3676_v6, 16  ;;  %v1316_v26 = vpack.c.bf16 %v1296_v31, %v1296_v31  ;;  %v1624_v55 = vshrl.u32 %v3676_v6, 16 }
 0x1d8   : > { %v3688_v3 = vsel %vm3168_vm6, %v1360_v7, %v1435_v52  ;;  %v1345_v63 = vunpack.c.l.b16 %v1315_v25  ;;  %v1633_v58 = vrot.slane %v1631_v48, 1 }
 0x1d9   : > { %v1767_v24 = vsel %vm855_vm4, %v1765_v43, %v1766_v14  ;;  %v1628_v56 = vrot.slane %v1626_v42, 1  ;;  %v1415_v10 = vunpack.c.l.b16 %v1316_v26 }
 0x1da   : > { %1793 = vrot.lane.b32.xlu2 %v1767_v24, %s2994_s24  ;;  %v1355_v50 = vpack.c.b16 %v1345_v63, %v1345_v63 }
 0x1db   : > { %v1629_v38 = vor.u32 %v1628_v56, %v1624_v55  ;;  %v1425_v19 = vpack.c.b16 %v1415_v10, %v1345_v63  ;;  %v1525_v59 = vpack.c.b16 %v1415_v10, %v1415_v10 }
 0x1dc   : > { %v1378_v41 = vshrl.u32 %v1355_v50, 16 }
 0x1dd   : > { %v1634_v23 = vsel %vm662_vm5, %v1629_v38, %v1633_v58  ;;  %v1472_v21 = vshrl.u32 %v1425_v19, 16  ;;  %v1554_v39 = vshll.u32 %v1525_v59, 16  ;;  %v1475_v17 = vshll.u32 %v1425_v19, 16 }
 0x1de   : > { %1723 = vrot.lane.b32.xlu0 %v1634_v23, %s2990_s6 }
 0x1df   : > { %v1474_v46 = vrot.slane %v1472_v21, 7  ;;  %v1556_v60 = vrot.slane %v1554_v39, 3 }
 0x1e1   : > { %v1477_v16 = vor.u32 %v1475_v17, %v1474_v46  ;;  %v3695_v53 = vsel %vm3168_vm6, %v1474_v46, %v1556_v60 }
 0x1e2   : > { %v1679_v9 = vshll.u32 %v3695_v53, 16 }
 0x1e3   : > { %v3699_v44 = vsel %vm3168_vm6, %v1378_v41, %v1477_v16 }
 0x1e4   : > { %v1674_v47 = vshll.u32 %v3699_v44, 16  ;;  %v1672_v62 = vshrl.u32 %v3699_v44, 16  ;;  %v1681_v11 = vrot.slane %v1679_v9, 1 }
 0x1e6   : > { %v1676_v2 = vrot.slane %v1674_v47, 1 }
 0x1e8   : > { %v1677_v54 = vor.u32 %v1676_v2, %v1672_v62 }
 0x1ea   : > { %v1682_v20 = vsel %vm662_vm5, %v1677_v54, %v1681_v11 }
 0x1eb   : > { %1731 = vrot.lane.b32.xlu2 %v1682_v20, %s2990_s6 }
 0x1f4   : > { %v1128_v13 = vpop.f32.mrf.mxu0 }
 0x1f5   : > { %v1195_v49 = vmul.f32 1.442695, %v1128_v13  ;;  %vm1169_vm14 = vcmp.gt.f32.partialorder %v1128_v13, 0.0 }
 0x1f7   : > { %2898 = vpow2.f32 %v1195_v49 }
 0x1fc   : > { %v1130_v0 = vpop.f32.mrf.mxu0 }
 0x1fd   : > { %v2899_v28 = vpop.eup %2898  ;;  %v1197_v29 = vmul.f32 1.442695, %v1130_v0  ;;  %vm1170_vm15 = vcmp.gt.f32.partialorder %v1130_v0, 0.0 }
 0x1fe   : > { %v2724_v32 = vadd.f32 -1.0, %v2899_v28 }
 0x1ff   : > { %2900 = vpow2.f32 %v1197_v29 }
 0x200   : > { %v1249_v61 = vmul.f32 1.6732632, %v2724_v32 }
 0x202   : > { %v1269_v45 = vsel %vm1169_vm14, %v1128_v13, %v1249_v61  ;;  %vm1829_vm14 = vcmask 130048  }
 0x203   : > { %v1148_v33 = vpop.f32.mrf.mxu2  ;;  %v1289_v27 = vmul.f32 1.050701, %v1269_v45 }
 0x204   : > { %v1211_v15 = vmul.f32 1.442695, %v1148_v33  ;;  %v1133_v35 = vpop.f32.mrf.mxu0  ;;  %vm1177_vm1 = vcmp.gt.f32.partialorder %v1148_v33, 0.0 }
 0x205   : > { %v2901_v18 = vpop.eup %2900  ;;  %v1199_v36 = vmul.f32 1.442695, %v1133_v35  ;;  %v1309_v7 = vpack.c.bf16 %v1289_v27, %v1289_v27  ;;  %vm1171_vm3 = vcmp.gt.f32.partialorder %v1133_v35, 0.0 }
 0x206   : > { %v2725_v37 = vadd.f32 -1.0, %v2901_v18  ;;  %2902 = vpow2.f32 %v1211_v15 }
 0x207   : > { %2904 = vpow2.f32 %v1199_v36  ;;  %v1342_v24 = vunpack.c.l.b16 %v1309_v7 }
 0x208   : > { %v1250_v30 = vmul.f32 1.6732632, %v2725_v37 }
 0x209   : > { %v1352_v59 = vpack.c.b16 %v1342_v24, %v1342_v24 }
 0x20a   : > { %v1270_v12 = vsel %vm1170_vm15, %v1130_v0, %v1250_v30 }
 0x20b   : > { %v1290_v34 = vmul.f32 1.050701, %v1270_v12  ;;  %v1150_v5 = vpop.f32.mrf.mxu2  ;;  %v1369_v54 = vshrl.u32 %v1352_v59, 16  ;;  %v1778_v59 = vrot.slane %v3695_v53, 1 }
 0x20c   : > { %v2903_v25 = vpop.eup %2902  ;;  %v1213_v31 = vmul.f32 1.442695, %v1150_v5  ;;  %v1135_v43 = vpop.f32.mrf.mxu0  ;;  %vm1178_vm7 = vcmp.gt.f32.partialorder %v1150_v5, 0.0 }
 0x20d   : > { %v2905_v14 = vpop.eup %2904  ;;  %v1310_v42 = vpack.c.bf16 %v1290_v34, %v1290_v34  ;;  %v2732_v48 = vadd.f32 -1.0, %v2903_v25  ;;  %v1201_v52 = vmul.f32 1.442695, %v1135_v43  ;;  %vm1172_vm9 = vcmp.gt.f32.partialorder %v1135_v43, 0.0 }
 0x20e   : > { %v2726_v26 = vadd.f32 -1.0, %v2905_v14  ;;  %2906 = vpow2.f32 %v1213_v31 }
 0x20f   : > { %v1412_v55 = vunpack.c.l.b16 %v1310_v42  ;;  %v1257_v56 = vmul.f32 1.6732632, %v2732_v48  ;;  %2908 = vpow2.f32 %v1201_v52 }
 0x210   : > { %v1251_v63 = vmul.f32 1.6732632, %v2726_v26 }
 0x211   : > { %v1422_v10 = vpack.c.b16 %v1412_v55, %v1342_v24  ;;  %v1522_v38 = vpack.c.b16 %v1412_v55, %v1412_v55  ;;  %v1277_v58 = vsel %vm1177_vm1, %v1148_v33, %v1257_v56 }
 0x212   : > { %v1271_v19 = vsel %vm1171_vm3, %v1133_v35, %v1251_v63  ;;  %v1297_v17 = vmul.f32 1.050701, %v1277_v58  ;;  %v1777_v63 = vrot.slane %v3699_v44, 1  ;;  %vm2464_vm3 = vcmask 1041409  }
 0x213   : > { %v1451_v23 = vshrl.u32 %v1422_v10, 16  ;;  %v1542_v50 = vshll.u32 %v1522_v38, 16  ;;  %v3706_v21 = vpop.f32.mrf.mxu2  ;;  %v1454_v46 = vshll.u32 %v1422_v10, 16  ;;  %v1291_v9 = vmul.f32 1.050701, %v1271_v19 }
 0x214   : > { %v2907_v39 = vpop.eup %2906  ;;  %v1215_v60 = vmul.f32 1.442695, %v3706_v21  ;;  %v3711_v0 = vpack.c.bf16 %v1297_v17, %v1297_v17  ;;  %v1602_v10 = vshll.u32 %v3688_v3, 16  ;;  %vm1179_vm10 = vcmp.gt.f32.partialorder %v3706_v21, 0.0 }
 0x215   : > { %v2909_v41 = vpop.eup %2908  ;;  %v1453_v16 = vrot.slane %v1451_v23, 7  ;;  %v1544_v47 = vrot.slane %v1542_v50, 3  ;;  %v2733_v62 = vadd.f32 -1.0, %v2907_v39  ;;  %v1311_v28 = vpack.c.bf16 %v1291_v9, %v1291_v9 }
 0x216   : > { %v2727_v2 = vadd.f32 -1.0, %v2909_v41  ;;  %2910 = vpow2.f32 %v1215_v60 }
 0x217   : > { %v1456_v11 = vor.u32 %v1454_v46, %v1453_v16  ;;  %v1258_v20 = vmul.f32 1.6732632, %v2733_v62  ;;  %v1592_v13 = vsel %vm3168_vm6, %v1453_v16, %v1544_v47  ;;  %v1343_v14 = vunpack.c.l.b16 %v1311_v28 }
 0x218   : > { %v1252_v49 = vmul.f32 1.6732632, %v2727_v2  ;;  %v1769_v15 = vrot.slane %v1592_v13, 1  ;;  %v1643_v37 = vshll.u32 %v1592_v13, 16  ;;  %v1779_v2 = vsel %vm855_vm4, %v1777_v63, %v1778_v59 }
 0x219   : > { %v1278_v29 = vsel %vm1178_vm7, %v1150_v5, %v1258_v20  ;;  %v3715_v32 = vsel %vm3168_vm6, %v1369_v54, %v1456_v11  ;;  %v1353_v46 = vpack.c.b16 %v1343_v14, %v1343_v14  ;;  %vm2467_vm7 = vcmask 1042434  }
 0x21a   : > { %v1298_v61 = vmul.f32 1.050701, %v1278_v29  ;;  %v1272_v33 = vsel %vm1172_vm9, %v1135_v43, %v1252_v49  ;;  %v1768_v45 = vrot.slane %v3715_v32, 1  ;;  %v1638_v36 = vshll.u32 %v3715_v32, 16 }
 0x21b   : > { %v1292_v35 = vmul.f32 1.050701, %v1272_v33  ;;  %v1155_v18 = vpop.f32.mrf.mxu2  ;;  %v1636_v25 = vshrl.u32 %v3715_v32, 16  ;;  %v1346_v43 = vunpack.c.l.b16 %v3711_v0  ;;  %v1645_v24 = vrot.slane %v1643_v37, 1 }
 0x21c   : > { %v2911_v27 = vpop.eup %2910  ;;  %v3719_v30 = vpack.c.bf16 %v1298_v61, %v1298_v61  ;;  %v1217_v12 = vmul.f32 1.442695, %v1155_v18  ;;  %v1770_v7 = vsel %vm855_vm4, %v1768_v45, %v1769_v15  ;;  %v1640_v31 = vrot.slane %v1638_v36, 1 }
 0x21d   : > { %v1312_v34 = vpack.c.bf16 %v1292_v35, %v1292_v35  ;;  %v2734_v5 = vadd.f32 -1.0, %v2911_v27  ;;  %1795 = vrot.lane.b32.xlu1 %v1770_v7, %s2994_s24  ;;  %v1356_v23 = vpack.c.b16 %v1346_v43, %v1346_v43  ;;  %v1372_v61 = vshrl.u32 %v1353_v46, 16 }
 0x21e   : > { %v1416_v42 = vunpack.c.l.b16 %v3719_v30  ;;  %2912 = vpow2.f32 %v1217_v12  ;;  %v1641_v26 = vor.u32 %v1640_v31, %v1636_v25  ;;  %vm1180_vm12 = vcmp.gt.f32.partialorder %v1155_v18, 0.0 }
 0x21f   : > { %v1413_v48 = vunpack.c.l.b16 %v1312_v34  ;;  %v1259_v52 = vmul.f32 1.6732632, %v2734_v5  ;;  %v1381_v13 = vshrl.u32 %v1356_v23, 16  ;;  %v1604_v35 = vrot.slane %v1602_v10, 1 }
 0x220   : > { %v1426_v55 = vpack.c.b16 %v1416_v42, %v1346_v43  ;;  %v1526_v56 = vpack.c.b16 %v1416_v42, %v1416_v42  ;;  %v1646_v19 = vsel %vm662_vm5, %v1641_v26, %v1645_v24  ;;  %v1607_v26 = vshll.u32 %v3682_v57, 16 }
 0x221   : > { %v1423_v38 = vpack.c.b16 %v1413_v48, %v1343_v14  ;;  %v1523_v58 = vpack.c.b16 %v1413_v48, %v1413_v48  ;;  %1725 = vrot.lane.b32.xlu0 %v1646_v19, %s2990_s6  ;;  %v1279_v41 = vsel %vm1179_vm10, %v3706_v21, %v1259_v52  ;;  %v1600_v52 = vshrl.u32 %v3688_v3, 16 }
 0x222   : > { %v1479_v50 = vshrl.u32 %v1426_v55, 16  ;;  %v1558_v39 = vshll.u32 %v1526_v56, 16  ;;  %v1482_v9 = vshll.u32 %v1426_v55, 16  ;;  %v1299_v28 = vmul.f32 1.050701, %v1279_v41 }
 0x223   : > { %v1458_v17 = vshrl.u32 %v1423_v38, 16  ;;  %v1546_v60 = vshll.u32 %v1523_v58, 16  ;;  %v1461_v53 = vshll.u32 %v1423_v38, 16  ;;  %v1605_v58 = vor.u32 %v1604_v35, %v1600_v52 }
 0x224   : > { %v2913_v16 = vpop.eup %2912  ;;  %v1481_v47 = vrot.slane %v1479_v50, 7  ;;  %v1560_v62 = vrot.slane %v1558_v39, 3  ;;  %v1319_v34 = vpack.c.bf16 %v1299_v28, %v1299_v28  ;;  %v1609_v50 = vrot.slane %v1607_v26, 1 }
 0x225   : > { %v1460_v54 = vrot.slane %v1458_v17, 7  ;;  %v1548_v11 = vrot.slane %v1546_v60, 3  ;;  %v2735_v20 = vadd.f32 -1.0, %v2913_v16  ;;  %1801 = vrot.lane.b32.xlu1 %v1779_v2, %s2994_s24  ;;  %vm2470_vm9 = vcmask 1043459  }
 0x226   : > { %v1484_v49 = vor.u32 %v1482_v9, %v1481_v47  ;;  %v1596_v29 = vsel %vm3168_vm6, %v1481_v47, %v1560_v62  ;;  %v1347_v10 = vunpack.c.l.b16 %v1319_v34  ;;  %v1610_v16 = vsel %vm662_vm5, %v1605_v58, %v1609_v50 }
 0x227   : > { %v1463_v21 = vor.u32 %v1461_v53, %v1460_v54  ;;  %v1260_v33 = vmul.f32 1.6732632, %v2735_v20  ;;  %v1593_v45 = vsel %vm3168_vm6, %v1460_v54, %v1548_v11  ;;  %v1781_v12 = vrot.slane %v1596_v29, 1 }
 0x228   : > { %v3741_v15 = vsel %vm3168_vm6, %v1381_v13, %v1484_v49  ;;  %v1772_v31 = vrot.slane %v1593_v45, 1  ;;  %v1691_v48 = vshll.u32 %v1596_v29, 16  ;;  %v1655_v2 = vshll.u32 %v1593_v45, 16 }
 0x229   : > { %v1280_v36 = vsel %vm1180_vm12, %v1155_v18, %v1260_v33  ;;  %v1158_v37 = vpop.f32.mrf.mxu2  ;;  %v1780_v27 = vrot.slane %v3741_v15, 1  ;;  %v3746_v7 = vsel %vm3168_vm6, %v1372_v61, %v1463_v21  ;;  %v1686_v42 = vshll.u32 %v3741_v15, 16 }
 0x22a   : > { %v1300_v5 = vmul.f32 1.050701, %v1280_v36  ;;  %v1219_v25 = vmul.f32 1.442695, %v1158_v37  ;;  %v1771_v14 = vrot.slane %v3746_v7, 1  ;;  %v1684_v55 = vshrl.u32 %v3741_v15, 16 }
 0x22b   : > { %v1782_v43 = vsel %vm855_vm4, %v1780_v27, %v1781_v12  ;;  %v1688_v56 = vrot.slane %v1686_v42, 1  ;;  %v1650_v63 = vshll.u32 %v3746_v7, 16  ;;  %v1693_v59 = vrot.slane %v1691_v48, 1 }
 0x22c   : > { %v1320_v18 = vpack.c.bf16 %v1300_v5, %v1300_v5  ;;  %2914 = vpow2.f32 %v1219_v25  ;;  %1803 = vrot.lane.b32.xlu2 %v1782_v43, %s2994_s24  ;;  %v1773_v24 = vsel %vm855_vm4, %v1771_v14, %v1772_v31  ;;  %v1648_v62 = vshrl.u32 %v3746_v7, 16  ;;  %v1722_v12 = vpop.permute.xlu2 %1721 }
 0x22d   : > { %1797 = vrot.lane.b32.xlu1 %v1773_v24, %s2994_s24  ;;  %v1689_v19 = vor.u32 %v1688_v56, %v1684_v55  ;;  %v1652_v17 = vrot.slane %v1650_v63, 1  ;;  %v1357_v54 = vpack.c.b16 %v1347_v10, %v1347_v10  ;;  %vm1181_vm13 = vcmp.gt.f32.partialorder %v1158_v37, 0.0 }
 0x22e   : > { %v1417_v38 = vunpack.c.l.b16 %v1320_v18  ;;  %v1657_v61 = vrot.slane %v1655_v2, 1  ;;  %v1812_v43 = vsel %vm941_vm8, %v3644_v4, %v1722_v12  ;;  %v1760_v18 = vrot.slane %v3682_v57, 1 }
 0x22f   : > { %v1694_v39 = vsel %vm662_vm5, %v1689_v19, %v1693_v59  ;;  %v1653_v49 = vor.u32 %v1652_v17, %v1648_v62  ;;  %v1384_v21 = vshrl.u32 %v1357_v54, 16  ;;  %v1774_v2 = vrot.slane %v3663_v40, 1 }
 0x230   : > { %v1427_v23 = vpack.c.b16 %v1417_v38, %v1347_v10  ;;  %1733 = vrot.lane.b32.xlu0 %v1694_v39, %s2990_s6  ;;  %v1527_v20 = vpack.c.b16 %v1417_v38, %v1417_v38  ;;  %v1775_v54 = vrot.slane %v3671_v22, 1  ;;  %vm2473_vm10 = vcmask 1044484  }
 0x231   : > { %v1160_v46 = vpop.f32.mrf.mxu2  ;;  %v1658_v36 = vsel %vm662_vm5, %v1653_v49, %v1657_v61  ;;  %vm2476_vm12 = vcmask 1045509  }
 0x232   : > { %v2915_v60 = vpop.eup %2914  ;;  %v1486_v41 = vshrl.u32 %v1427_v23, 16  ;;  %v1221_v9 = vmul.f32 1.442695, %v1160_v46  ;;  %v1489_v11 = vshll.u32 %v1427_v23, 16  ;;  %v1562_v33 = vshll.u32 %v1527_v20, 16 }
 0x233   : > { %v2736_v47 = vadd.f32 -1.0, %v2915_v60  ;;  %vm1182_vm15 = vcmp.gt.f32.partialorder %v1160_v46, 0.0 }
 0x234   : > { %v1488_v53 = vrot.slane %v1486_v41, 7  ;;  %1719 = vrot.lane.b32.xlu2 %v1610_v16, %s2990_s6  ;;  %2916 = vpow2.f32 %v1221_v9  ;;  %v1564_v34 = vrot.slane %v1562_v33, 3  ;;  %v1794_v61 = vpop.permute.xlu2 %1793 }
 0x235   : > { %v1261_v13 = vmul.f32 1.6732632, %v2736_v47 }
 0x236   : > { %v1491_v28 = vor.u32 %v1489_v11, %v1488_v53  ;;  %v1597_v26 = vsel %vm3168_vm6, %v1488_v53, %v1564_v34  ;;  %v1667_v34 = vshll.u32 %v3671_v22, 16  ;;  %v1932_v22 = vld [vmem:[%s4088_s2 + $0x20] sm:$0xf] }
 0x237   : > { %v1281_v29 = vsel %vm1181_vm13, %v1158_v37, %v1261_v13  ;;  %v1759_v37 = vrot.slane %v3688_v3, 1  ;;  %v1703_v38 = vshll.u32 %v1597_v26, 16  ;;  %v1662_v13 = vshll.u32 %v3663_v40, 16 }
 0x238   : > { %v1301_v35 = vmul.f32 1.050701, %v1281_v29  ;;  %1727 = vrot.lane.b32.xlu0 %v1658_v36, %s2990_s6  ;;  %v3767_v45 = vsel %vm3168_vm6, %v1384_v21, %v1491_v28  ;;  %v1776_v28 = vsel %vm855_vm4, %v1774_v2, %v1775_v54  ;;  %vm2479_vm13 = vcmask 1046534  }
 0x239   : > { %v1698_v31 = vshll.u32 %v3767_v45, 16  ;;  %v1761_v55 = vsel %vm855_vm4, %v1759_v37, %v1760_v18  ;;  %v1783_v57 = vrot.slane %v3767_v45, 1  ;;  %v1696_v10 = vshrl.u32 %v3767_v45, 16 }
 0x23a   : > { %v2917_v27 = vpop.eup %2916  ;;  %v1321_v25 = vpack.c.bf16 %v1301_v35, %v1301_v35  ;;  %v1705_v17 = vrot.slane %v1703_v38, 1 }
 0x23b   : > { %v2737_v5 = vadd.f32 -1.0, %v2917_v27  ;;  %v1700_v56 = vrot.slane %v1698_v31, 1  ;;  %v1664_v27 = vrot.slane %v1662_v13, 1 }
 0x23c   : > { %v1792_v42 = vpop.permute.xlu1 %1791  ;;  %v1323_v24 = vsel %vm3065_vm0, %v3711_v0, %v1321_v25  ;;  %v1784_v0 = vrot.slane %v1597_v26, 1  ;;  %v1950_v26 = vunpack.c.l.b16 %v1932_v22 }
 0x23d   : > { %v1262_v14 = vmul.f32 1.6732632, %v2737_v5  ;;  %v3774_v48 = vsel %vm1829_vm14, %v1812_v43, %v1792_v42  ;;  %v1327_v58 = vsel %vm3087_vm2, %v1321_v25, %v1323_v24  ;;  %v1701_v59 = vor.u32 %v1700_v56, %v1696_v10  ;;  %v2819_v56 = vld [vmem:[%s4088_s2 + $0x10] sm:$0xff]  ;;  %v2818_v10 = vld [vmem:[%s4088_s2 + $0x8] sm:$0xff] }
 0x23e   : > { %1858 = vrot.lane.b32.xlu1 %v3774_v48, %s2993_s9  ;;  %v1348_v50 = vunpack.c.l.b16 %v1327_v58  ;;  %v1669_v42 = vrot.slane %v1667_v34, 1  ;;  %v1955_v24 = vpack.c.b16 %v1950_v26, %v1950_v26 }
 0x23f   : > { %v1282_v52 = vsel %vm1182_vm15, %v1160_v46, %v1262_v14  ;;  %v1785_v46 = vsel %vm855_vm4, %v1783_v57, %v1784_v0  ;;  %v1706_v16 = vsel %vm662_vm5, %v1701_v59, %v1705_v17 }
 0x240   : > { %v1302_v4 = vmul.f32 1.050701, %v1282_v52  ;;  %1789 = vrot.lane.b32.xlu0 %v1761_v55, %s2994_s24  ;;  %v1358_v1 = vpack.c.b16 %v1348_v50, %v1348_v50  ;;  %v2820_v55 = vld [vmem:[%s4088_s2 + $0x18] sm:$0xff] }
 0x242   : > { %v1322_v63 = vpack.c.bf16 %v1302_v4, %v1302_v4  ;;  %v1387_v53 = vshrl.u32 %v1358_v1, 16 }
 0x244   : > { %v1324_v19 = vsel %vm3065_vm0, %v3719_v30, %v1322_v63  ;;  %vm1977_vm0 = vcmask 1043456  }
 0x245   : > { %v1328_v23 = vsel %vm3087_vm2, %v1322_v63, %v1324_v19  ;;  %v1979_v4 = vsel %vm1977_vm0, %v1955_v24, 0  ;;  %v2817_v19 = vld [vmem:[%s4088_s2] sm:$0xff]  ;;  %v1732_v0 = vpop.permute.xlu2 %1731  ;;  %vm1907_vm2 = vcmask 392192  }
 0x246   : > { %v1418_v39 = vunpack.c.l.b16 %v1328_v23  ;;  %1805 = vrot.lane.b32.xlu1 %v1785_v46, %s2994_s24  ;;  %1984 = vmatpush.bf16.msra.mxu1 %v1979_v4 }
 0x247   : > { %2824 = vmatpush.bf16.msra.mxu3 %v1979_v4 }
 0x248   : > { %v1428_v60 = vpack.c.b16 %v1418_v39, %v1348_v50  ;;  %v1528_v41 = vpack.c.b16 %v1418_v39, %v1418_v39  ;;  %1735 = vrot.lane.b32.xlu0 %v1706_v16, %s2990_s6 }
 0x24a   : > { %v1493_v30 = vshrl.u32 %v1428_v60, 16  ;;  %v1566_v47 = vshll.u32 %v1528_v41, 16  ;;  %v1496_v62 = vshll.u32 %v1428_v60, 16  ;;  %1985 = vmatpush.bf16.msra.mxu1 %v2820_v55 }
 0x24b   : > { %2825 = vmatpush.bf16.msra.mxu3 %v2820_v55 }
 0x24c   : > { %v1495_v9 = vrot.slane %v1493_v30, 7  ;;  %v1568_v8 = vrot.slane %v1566_v47, 3 }
 0x24e   : > { %v1498_v11 = vor.u32 %v1496_v62, %v1495_v9  ;;  %v1598_v20 = vsel %vm3168_vm6, %v1495_v9, %v1568_v8  ;;  %1986 = vmatpush.bf16.msra.mxu1 %v2819_v56 }
 0x24f   : > { %v1715_v35 = vshll.u32 %v1598_v20, 16  ;;  %v1787_v14 = vrot.slane %v1598_v20, 1  ;;  %2826 = vmatpush.bf16.msra.mxu3 %v2819_v56 }
 0x250   : > { %v1724_v49 = vpop.permute.xlu0 %1723  ;;  %v3807_v29 = vsel %vm3168_vm6, %v1387_v53, %v1498_v11  ;;  %1799 = vrot.lane.b32.xlu0 %v1776_v28, %s2994_s24  ;;  %vm2158_vm6 = vcmask 60416  }
 0x251   : > { %v1814_v21 = vsel %vm941_vm8, %v3676_v6, %v1724_v49  ;;  %v1710_v33 = vshll.u32 %v3807_v29, 16  ;;  %v1708_v51 = vshrl.u32 %v3807_v29, 16  ;;  %v1660_v6 = vshrl.u32 %v3663_v40, 16 }
 0x252   : > { %v3814_v36 = vsel %vm1829_vm14, %v1814_v21, %v1794_v61  ;;  %v1717_v25 = vrot.slane %v1715_v35, 1  ;;  %v1786_v37 = vrot.slane %v3807_v29, 1  ;;  %1987 = vmatpush.bf16.msra.mxu1 %v2818_v10 }
 0x253   : > { %1860 = vrot.lane.b32.xlu1 %v3814_v36, %s2993_s9  ;;  %1875 = vrot.lane.b32.xlu2 %v3814_v36, %s2995_s25  ;;  %v1712_v12 = vrot.slane %v1710_v33, 1  ;;  %v1665_v31 = vor.u32 %v1664_v27, %v1660_v6 }
 0x254   : > { %v1788_v18 = vsel %vm855_vm4, %v1786_v37, %v1787_v14  ;;  %2827 = vmatpush.bf16.msra.mxu3 %v2818_v10  ;;  %vm1960_vm4 = vcmask 588800  }
 0x255   : > { %v1713_v5 = vor.u32 %v1712_v12, %v1708_v51  ;;  %v1670_v52 = vsel %vm662_vm5, %v1665_v31, %v1669_v42 }
 0x256   : > { %1988 = vmatpush.bf16.msra.mxu1 %v2817_v19 }
 0x257   : > { %v1718_v43 = vsel %vm662_vm5, %v1713_v5, %v1717_v25 }
 0x258   : > { %1737 = vrot.lane.b32.xlu0 %v1718_v43, %s2990_s6  ;;  %2828 = vmatpush.bf16.msra.mxu3 %v2817_v19 }
 0x25b   : > { %1807 = vrot.lane.b32.xlu1 %v1788_v18, %s2994_s24  ;;  %1729 = vrot.lane.b32.xlu2 %v1670_v52, %s2990_s6  ;;  %s2686_s24 = sshll.u32 %s2972_s15, 2 }
 0x25c   : > { %p3940_p11 = scmp.lt.s32.totalorder %s2686_s24, 11 }
 0x25e   : > { %s4117_s24 = smov (!%p3940_p11, %s2686_s24), 11 }
 0x286   : > { %v1804_v50 = vpop.permute.xlu2 %1803 }
 0x28e   : > { %v1720_v16 = vpop.permute.xlu2 %1719 }
 0x28f   : > { %v1796_v63 = vpop.permute.xlu1 %1795  ;;  %v1810_v30 = vsel %vm941_vm8, %v3688_v3, %v1720_v16 }
 0x293   : > { %v1726_v57 = vpop.permute.xlu0 %1725 }
 0x294   : > { %v1816_v38 = vsel %vm941_vm8, %v3715_v32, %v1726_v57  ;;  %v1822_v32 = vsel %vm941_vm8, %v3699_v44, %v1732_v0 }
 0x295   : > { %v3845_v58 = vsel %vm1829_vm14, %v1816_v38, %v1796_v63 }
 0x296   : > { %1862 = vrot.lane.b32.xlu1 %v3845_v58, %s2993_s9  ;;  %1877 = vrot.lane.b32.xlu2 %v3845_v58, %s2995_s25 }
 0x297   : > { %v1802_v59 = vpop.permute.xlu1 %1801 }
 0x298   : > { %v1843_v23 = vsel %vm1829_vm14, %v1822_v32, %v1802_v59 }
 0x29e   : > { %1868 = vrot.lane.b32.xlu2 %v1843_v23, %s2993_s9 }
 0x29f   : > { %v1798_v60 = vpop.permute.xlu1 %1797 }
 0x2a2   : > { %v1734_v39 = vpop.permute.xlu0 %1733 }
 0x2a3   : > { %v1824_v46 = vsel %vm941_vm8, %v3741_v15, %v1734_v39 }
 0x2a4   : > { %v3861_v17 = vsel %vm1829_vm14, %v1824_v46, %v1804_v50 }
 0x2a5   : > { %1885 = vrot.lane.b32.xlu0 %v3861_v17, %s2995_s25 }
 0x2aa   : > { %v1728_v41 = vpop.permute.xlu0 %1727 }
 0x2ab   : > { %v1818_v44 = vsel %vm941_vm8, %v3746_v7, %v1728_v41 }
 0x2ac   : > { %v3868_v1 = vsel %vm1829_vm14, %v1818_v44, %v1798_v60 }
 0x2ad   : > { %1879 = vrot.lane.b32.xlu2 %v3868_v1, %s2995_s25  ;;  %1870 = vrot.lane.b32.xlu0 %v3861_v17, %s2993_s9  ;;  %v1876_v7 = vpop.permute.xlu2 %1875 }
 0x2b0   : > { %v1859_v15 = vpop.permute.xlu1 %1858 }
 0x2b2   : > { %v1790_v47 = vpop.permute.xlu0 %1789 }
 0x2b3   : > { %v1831_v9 = vsel %vm1829_vm14, %v1810_v30, %v1790_v47 }
 0x2b4   : > { %v1892_v62 = vsel %vm1038_vm11, %v1831_v9, %v1859_v15 }
 0x2b5   : > { %1864 = vrot.lane.b32.xlu2 %v3868_v1, %s2993_s9  ;;  %v1909_v8 = vsel %vm1907_vm2, %v1892_v62, %v1876_v7  ;;  %v1730_v11 = vpop.permute.xlu2 %1729 }
 0x2b6   : > { %2754 = vmatmul.msk.bf16.vlgmr.msra.gmra.mxu1 %vm1960_vm4, %v1909_v8  ;;  %v1820_v20 = vsel %vm941_vm8, %v3663_v40, %v1730_v11 }
 0x2b8   : > { %v1806_v54 = vpop.permute.xlu1 %1805 }
 0x2ba   : > { %v1736_v2 = vpop.permute.xlu0 %1735 }
 0x2bb   : > { %v1826_v3 = vsel %vm941_vm8, %v3767_v45, %v1736_v2 }
 0x2bc   : > { %v1847_v53 = vsel %vm1829_vm14, %v1826_v3, %v1806_v54 }
 0x2bd   : > { %1887 = vrot.lane.b32.xlu1 %v1847_v53, %s2995_s25 }
 0x2c2   : > { %v1800_v13 = vpop.permute.xlu0 %1799 }
 0x2c3   : > { %v1841_v49 = vsel %vm1829_vm14, %v1820_v20, %v1800_v13 }
 0x2c4   : > { %1881 = vrot.lane.b32.xlu0 %v1841_v49, %s2995_s25 }
 0x2c5   : > { %v1861_v28 = vpop.permute.xlu1 %1860  ;;  %1872 = vrot.lane.b32.xlu1 %v1847_v53, %s2993_s9 }
 0x2c6   : > { %v1894_v40 = vsel %vm1038_vm11, %v3774_v48, %v1861_v28 }
 0x2ca   : > { %v1738_v61 = vpop.permute.xlu0 %1737 }
 0x2cb   : > { %v1828_v45 = vsel %vm941_vm8, %v3807_v29, %v1738_v61 }
 0x2cc   : > { %1866 = vrot.lane.b32.xlu0 %v1841_v49, %s2993_s9  ;;  %s2831_s9 = smul.u32 48, %s4109_s16  ;;  %s232_s16 = sadd.s32 %s2830_s26, %s4117_s24 }
 0x2cd   : > { %v1808_v21 = vpop.permute.xlu1 %1807  ;;  %1883 = vrot.lane.b32.xlu1 %v1843_v23, %s2995_s25  ;;  %s2687_s15 = sshll.u32 %s232_s16, 2 }
 0x2ce   : > { %v1849_v33 = vsel %vm1829_vm14, %v1828_v45, %v1808_v21  ;;  %s243_s12 = sadd.s32 %s2831_s9, %s2689_s11  ;;  %vm2482_vm14 = vcmask 1047559   ;;  %s3962_s29 = scalar_lea.vmem %s4089_s3, %s2687_s15 }
 0x2cf   : > { %1889 = vrot.lane.b32.xlu2 %v1849_v33, %s2995_s25  ;;  %s2690_s13 = sshll.u32 %s243_s12, 2 }
 0x2d0   : > { %s3925_s23 = scalar_lea.vmem %s4090_s4, %s2690_s13 }
 0x2f0   : > { %v1878_v35 = vpop.permute.xlu2 %1877 }
 0x2f1   : > { %v1911_v27 = vsel %vm1907_vm2, %v1894_v40, %v1878_v35 }
 0x2f2   : > { %2755 = vmatmul.msk.bf16.gmra.mxu1 %vm1960_vm4, %v1911_v27 }
 0x2f8   : > { %v1869_v51 = vpop.permute.xlu2 %1868 }
 0x2f9   : > { %v1902_v5 = vsel %vm1038_vm11, %v1841_v49, %v1869_v51 }
 0x307   : > { %v1880_v12 = vpop.permute.xlu2 %1879 }
 0x308   : > { %v1863_v29 = vpop.permute.xlu1 %1862 }
 0x309   : > { %v1896_v6 = vsel %vm1038_vm11, %v3814_v36, %v1863_v29 }
 0x30a   : > { %v1913_v34 = vsel %vm1907_vm2, %v1896_v6, %v1880_v12 }
 0x30b   : > { %2756 = vmatmul.msk.bf16.gmra.mxu1 %vm1960_vm4, %v1913_v34 }
 0x30f   : > { %v1865_v36 = vpop.permute.xlu2 %1864 }
 0x310   : > { %v1898_v52 = vsel %vm1038_vm11, %v3845_v58, %v1865_v36 }
 0x317   : > { %v1886_v48 = vpop.permute.xlu0 %1885 }
 0x318   : > { %v1919_v25 = vsel %vm1907_vm2, %v1902_v5, %v1886_v48 }
 0x319   : > { %2759 = vmatmul.msk.bf16.vlgmr.msra.gmra.mxu3 %vm1960_vm4, %v1919_v25 }
 0x31f   : > { %v1871_v37 = vpop.permute.xlu0 %1870 }
 0x320   : > { %v1904_v31 = vsel %vm1038_vm11, %v1843_v23, %v1871_v37 }
 0x329   : > { %v1890_v10 = vpop.permute.xlu2 %1889 }
 0x32f   : > { %v1888_v43 = vpop.permute.xlu1 %1887 }
 0x330   : > { %v1921_v14 = vsel %vm1907_vm2, %v1904_v31, %v1888_v43 }
 0x331   : > { %2760 = vmatmul.msk.bf16.gmra.mxu3 %vm1960_vm4, %v1921_v14 }
 0x333   : > { %v1990_v42 = vpop.f32.mrf.mxu1 }
 0x334   : > { %v2046_v18 = vmul.f32 1.442695, %v1990_v42  ;;  %vm2030_vm5 = vcmp.gt.f32.partialorder %v1990_v42, 0.0 }
 0x336   : > { %2918 = vpow2.f32 %v2046_v18  ;;  %v1882_v22 = vpop.permute.xlu0 %1881 }
 0x337   : > { %v1915_v26 = vsel %vm1907_vm2, %v1898_v52, %v1882_v22  ;;  %v1873_v24 = vpop.permute.xlu1 %1872 }
 0x338   : > { %2757 = vmatmul.msk.bf16.gmra.mxu1 %vm1960_vm4, %v1915_v26  ;;  %v1906_v57 = vsel %vm1038_vm11, %v3861_v17, %v1873_v24 }
 0x339   : > { %v1923_v58 = vsel %vm1907_vm2, %v1906_v57, %v1890_v10 }
 0x33b   : > { %v1992_v4 = vpop.f32.mrf.mxu1 }
 0x33c   : > { %v2919_v55 = vpop.eup %2918  ;;  %v2048_v56 = vmul.f32 1.442695, %v1992_v4  ;;  %vm2031_vm8 = vcmp.gt.f32.partialorder %v1992_v4, 0.0 }
 0x33d   : > { %v2762_v63 = vadd.f32 -1.0, %v2919_v55 }
 0x33e   : > { %2920 = vpow2.f32 %v2048_v56  ;;  %v1867_v0 = vpop.permute.xlu0 %1866 }
 0x33f   : > { %v2094_v38 = vmul.f32 1.6732632, %v2762_v63  ;;  %v1900_v50 = vsel %vm1038_vm11, %v3868_v1, %v1867_v0  ;;  %v1884_v39 = vpop.permute.xlu1 %1883 }
 0x340   : > { %v1917_v60 = vsel %vm1907_vm2, %v1900_v50, %v1884_v39 }
 0x341   : > { %v2110_v19 = vsel %vm2030_vm5, %v1990_v42, %v2094_v38  ;;  %2761 = vmatmul.msk.bf16.gmra.mxu3 %vm1960_vm4, %v1923_v58 }
 0x342   : > { %v2126_v59 = vmul.f32 1.050701, %v2110_v19 }
 0x344   : > { %v2921_v32 = vpop.eup %2920  ;;  %v2142_v23 = vpack.c.bf16 %v2126_v59, %v2126_v59 }
 0x345   : > { %v2763_v46 = vadd.f32 -1.0, %v2921_v32 }
 0x346   : > { %2159 = vst.msk [vmem:[%s3925_s23] sm:$0xf] %vm2158_vm6, %v2142_v23 }
 0x347   : > { %v2095_v17 = vmul.f32 1.6732632, %v2763_v46 }
 0x348   : > { %2758 = vmatmul.msk.bf16.gmra.mxu1 %vm1960_vm4, %v1917_v60 }
 0x349   : > { %v2111_v41 = vsel %vm2031_vm8, %v1992_v4, %v2095_v17 }
 0x34a   : > { %v2127_v44 = vmul.f32 1.050701, %v2111_v41 }
 0x34c   : > { %v2143_v16 = vpack.c.bf16 %v2127_v44, %v2127_v44 }
 0x34e   : > { %2160 = vst.msk [vmem:[%s3925_s23 + $0x4] sm:$0xf] %vm2158_vm6, %v2143_v16 }
 0x36f   : > { %v1995_v15 = vpop.f32.mrf.mxu1 }
 0x370   : > { %v2050_v30 = vmul.f32 1.442695, %v1995_v15  ;;  %vm2032_vm11 = vcmp.gt.f32.partialorder %v1995_v15, 0.0 }
 0x372   : > { %2922 = vpow2.f32 %v2050_v30 }
 0x377   : > { %v1997_v1 = vpop.f32.mrf.mxu1 }
 0x378   : > { %v2923_v47 = vpop.eup %2922  ;;  %v2052_v9 = vmul.f32 1.442695, %v1997_v1  ;;  %vm2033_vm1 = vcmp.gt.f32.partialorder %v1997_v1, 0.0 }
 0x379   : > { %v2764_v7 = vadd.f32 -1.0, %v2923_v47 }
 0x37a   : > { %2924 = vpow2.f32 %v2052_v9 }
 0x37b   : > { %v2096_v62 = vmul.f32 1.6732632, %v2764_v7 }
 0x37d   : > { %v2112_v8 = vsel %vm2032_vm11, %v1995_v15, %v2096_v62 }
 0x37e   : > { %v2128_v2 = vmul.f32 1.050701, %v2112_v8 }
 0x380   : > { %v2925_v54 = vpop.eup %2924  ;;  %v2144_v3 = vpack.c.bf16 %v2128_v2, %v2128_v2  ;;  %v2175_v53 = vmax.f32 %v2126_v59, %v2128_v2 }
 0x381   : > { %v2765_v11 = vadd.f32 -1.0, %v2925_v54 }
 0x382   : > { %2161 = vst.msk [vmem:[%s3925_s23 + $0x8] sm:$0xf] %vm2158_vm6, %v2144_v3  ;;  %v2191_v20 = vrot.slane %v2175_v53, 2  ;;  %v2192_v13 = vrot.slane %v2175_v53, 4  ;;  %v2193_v49 = vrot.slane %v2175_v53, 6  ;;  %v2778_v28 = vrot.slane %v2175_v53, 9 }
 0x383   : > { %v2097_v61 = vmul.f32 1.6732632, %v2765_v11 }
 0x384   : > { %v2779_v45 = vrot.slane %v2191_v20, 9  ;;  %v2780_v21 = vrot.slane %v2192_v13, 9  ;;  %v2781_v33 = vrot.slane %v2193_v49, 9  ;;  %v2335_v40 = vmax.f32 %v2175_v53, %v2778_v28 }
 0x385   : > { %v2113_v35 = vsel %vm2033_vm1, %v1997_v1, %v2097_v61 }
 0x386   : > { %v2336_v27 = vmax.f32 %v2191_v20, %v2779_v45  ;;  %v2337_v51 = vmax.f32 %v2192_v13, %v2780_v21  ;;  %v2338_v29 = vmax.f32 %v2193_v49, %v2781_v33  ;;  %v2129_v12 = vmul.f32 1.050701, %v2113_v35 }
 0x387   : > { %v2367_v6 = vpack.c.bf16 %v2335_v40, %v2335_v40 }
 0x388   : > { %v2368_v34 = vpack.c.bf16 %v2336_v27, %v2336_v27  ;;  %v2369_v5 = vpack.c.bf16 %v2337_v51, %v2337_v51  ;;  %v2000_v48 = vpop.f32.mrf.mxu1  ;;  %v2145_v25 = vpack.c.bf16 %v2129_v12, %v2129_v12  ;;  %v2176_v37 = vmax.f32 %v2127_v44, %v2129_v12 }
 0x389   : > { %v2054_v31 = vmul.f32 1.442695, %v2000_v48  ;;  %v2370_v43 = vpack.c.bf16 %v2338_v29, %v2338_v29  ;;  %v2431_v26 = vunpack.c.l.b16 %v2367_v6  ;;  %vm2034_vm15 = vcmp.gt.f32.partialorder %v2000_v48, 0.0 }
 0x38a   : > { %v2432_v14 = vunpack.c.l.b16 %v2368_v34  ;;  %v2433_v36 = vunpack.c.l.b16 %v2369_v5  ;;  %2162 = vst.msk [vmem:[%s3925_s23 + $0xc] sm:$0xf] %vm2158_vm6, %v2145_v25  ;;  %v2194_v42 = vrot.slane %v2176_v37, 2  ;;  %v2195_v18 = vrot.slane %v2176_v37, 4 }
 0x38b   : > { %v2196_v52 = vrot.slane %v2176_v37, 6  ;;  %v2782_v22 = vrot.slane %v2176_v37, 9  ;;  %2926 = vpow2.f32 %v2054_v31  ;;  %v2434_v57 = vunpack.c.l.b16 %v2370_v43 }
 0x38c   : > { %v2463_v24 = vrot.slane %v2432_v14, 7  ;;  %v2783_v4 = vrot.slane %v2194_v42, 9  ;;  %v2784_v55 = vrot.slane %v2195_v18, 9  ;;  %v2466_v10 = vrot.slane %v2433_v36, 6 }
 0x38d   : > { %v2785_v56 = vrot.slane %v2196_v52, 9  ;;  %v2339_v63 = vmax.f32 %v2176_v37, %v2782_v22  ;;  %v2469_v60 = vrot.slane %v2434_v57, 5 }
 0x38e   : > { %v2465_v38 = vsel %vm2464_vm3, %v2463_v24, %v2431_v26  ;;  %v2340_v58 = vmax.f32 %v2194_v42, %v2783_v4  ;;  %v2341_v19 = vmax.f32 %v2195_v18, %v2784_v55 }
 0x38f   : > { %v2342_v0 = vmax.f32 %v2196_v52, %v2785_v56  ;;  %v2371_v59 = vpack.c.bf16 %v2339_v63, %v2339_v63  ;;  %v2468_v17 = vsel %vm2467_vm7, %v2466_v10, %v2465_v38 }
 0x390   : > { %v2002_v32 = vpop.f32.mrf.mxu1  ;;  %v2372_v23 = vpack.c.bf16 %v2340_v58, %v2340_v58  ;;  %v2373_v50 = vpack.c.bf16 %v2341_v19, %v2341_v19  ;;  %v2471_v9 = vsel %vm2470_vm9, %v2469_v60, %v2468_v17 }
 0x391   : > { %v2374_v39 = vpack.c.bf16 %v2342_v0, %v2342_v0  ;;  %v2927_v46 = vpop.eup %2926  ;;  %v2435_v41 = vunpack.c.l.b16 %v2371_v59  ;;  %v2056_v44 = vmul.f32 1.442695, %v2002_v32  ;;  %vm2035_vm0 = vcmp.gt.f32.partialorder %v2002_v32, 0.0 }
 0x392   : > { %v2436_v16 = vunpack.c.l.b16 %v2372_v23  ;;  %v2437_v15 = vunpack.c.l.b16 %v2373_v50  ;;  %v2766_v1 = vadd.f32 -1.0, %v2927_v46 }
 0x393   : > { %v2438_v30 = vunpack.c.l.b16 %v2374_v39  ;;  %v2472_v47 = vrot.slane %v2435_v41, 4  ;;  %2928 = vpow2.f32 %v2056_v44 }
 0x394   : > { %v2475_v7 = vrot.slane %v2436_v16, 3  ;;  %v2478_v62 = vrot.slane %v2437_v15, 2  ;;  %v2098_v8 = vmul.f32 1.6732632, %v2766_v1 }
 0x395   : > { %v2474_v2 = vsel %vm2473_vm10, %v2472_v47, %v2471_v9  ;;  %v2481_v3 = vrot.slane %v2438_v30, 1 }
 0x396   : > { %v2477_v54 = vsel %vm2476_vm12, %v2475_v7, %v2474_v2  ;;  %v2114_v53 = vsel %vm2034_vm15, %v2000_v48, %v2098_v8 }
 0x397   : > { %v2480_v11 = vsel %vm2479_vm13, %v2478_v62, %v2477_v54  ;;  %v3957_v20 = vmul.f32 1.050701, %v2114_v53 }
 0x398   : > { %v2483_v13 = vsel %vm2482_vm14, %v2481_v3, %v2480_v11 }
 0x399   : > { %v2929_v49 = vpop.eup %2928  ;;  %v2526_v28 = vpack.c.b16 %v2483_v13, %v2483_v13  ;;  %v2146_v61 = vpack.c.bf16 %v3957_v20, %v3957_v20 }
 0x39a   : > { %v2767_v45 = vadd.f32 -1.0, %v2929_v49 }
 0x39b   : > { %2534 = vst.msk [vmem:[%s3962_s29] sm:$0xf] %vm2158_vm6, %v2526_v28 }
 0x39c   : > { %2163 = vst.msk [vmem:[%s3925_s23 + $0x10] sm:$0xf] %vm2158_vm6, %v2146_v61  ;;  %v2099_v21 = vmul.f32 1.6732632, %v2767_v45  ;;  %v2015_v33 = vpop.f32.mrf.mxu3 }
 0x39d   : > { %v2066_v40 = vmul.f32 1.442695, %v2015_v33  ;;  %vm2040_vm2 = vcmp.gt.f32.partialorder %v2015_v33, 0.0 }
 0x39e   : > { %v2115_v35 = vsel %vm2035_vm0, %v2002_v32, %v2099_v21 }
 0x39f   : > { %v3971_v27 = vmul.f32 1.050701, %v2115_v35  ;;  %2930 = vpow2.f32 %v2066_v40 }
 0x3a1   : > { %v2147_v51 = vpack.c.bf16 %v3971_v27, %v3971_v27 }
 0x3a3   : > { %2164 = vst.msk [vmem:[%s3925_s23 + $0x14] sm:$0xf] %vm2158_vm6, %v2147_v51 }
 0x3a4   : > { %v2017_v29 = vpop.f32.mrf.mxu3 }
 0x3a5   : > { %v2931_v12 = vpop.eup %2930  ;;  %v2068_v6 = vmul.f32 1.442695, %v2017_v29  ;;  %vm2041_vm4 = vcmp.gt.f32.partialorder %v2017_v29, 0.0 }
 0x3a6   : > { %v2772_v34 = vadd.f32 -1.0, %v2931_v12 }
 0x3a7   : > { %2932 = vpow2.f32 %v2068_v6 }
 0x3a8   : > { %v2104_v5 = vmul.f32 1.6732632, %v2772_v34 }
 0x3aa   : > { %v2120_v48 = vsel %vm2040_vm2, %v2015_v33, %v2104_v5 }
 0x3ab   : > { %v3977_v25 = vmul.f32 1.050701, %v2120_v48 }
 0x3ad   : > { %v2933_v37 = vpop.eup %2932  ;;  %v2152_v31 = vpack.c.bf16 %v3977_v25, %v3977_v25 }
 0x3ae   : > { %v2773_v43 = vadd.f32 -1.0, %v2933_v37 }
 0x3af   : > { %2169 = vst.msk [vmem:[%s3925_s23 + $0x28] sm:$0xf] %vm2158_vm6, %v2152_v31 }
 0x3b0   : > { %v2105_v14 = vmul.f32 1.6732632, %v2773_v43 }
 0x3b2   : > { %v2121_v36 = vsel %vm2041_vm4, %v2017_v29, %v2105_v14 }
 0x3b3   : > { %v3983_v42 = vmul.f32 1.050701, %v2121_v36 }
 0x3b4   : > { %v2020_v18 = vpop.f32.mrf.mxu3 }
 0x3b5   : > { %v2153_v52 = vpack.c.bf16 %v3983_v42, %v3983_v42  ;;  %v2070_v22 = vmul.f32 1.442695, %v2020_v18  ;;  %v2005_v26 = vpop.f32.mrf.mxu1  ;;  %vm2042_vm5 = vcmp.gt.f32.partialorder %v2020_v18, 0.0 }
 0x3b6   : > { %v2058_v24 = vmul.f32 1.442695, %v2005_v26  ;;  %vm2036_vm8 = vcmp.gt.f32.partialorder %v2005_v26, 0.0 }
 0x3b7   : > { %2170 = vst.msk [vmem:[%s3925_s23 + $0x2c] sm:$0xf] %vm2158_vm6, %v2153_v52  ;;  %2934 = vpow2.f32 %v2070_v22 }
 0x3b8   : > { %2936 = vpow2.f32 %v2058_v24 }
 0x3bc   : > { %v2022_v4 = vpop.f32.mrf.mxu3 }
 0x3bd   : > { %v2935_v55 = vpop.eup %2934  ;;  %v2072_v56 = vmul.f32 1.442695, %v2022_v4  ;;  %v2007_v63 = vpop.f32.mrf.mxu1  ;;  %vm2043_vm11 = vcmp.gt.f32.partialorder %v2022_v4, 0.0 }
 0x3be   : > { %v2937_v57 = vpop.eup %2936  ;;  %v2774_v10 = vadd.f32 -1.0, %v2935_v55  ;;  %v2060_v38 = vmul.f32 1.442695, %v2007_v63  ;;  %vm2037_vm1 = vcmp.gt.f32.partialorder %v2007_v63, 0.0 }
 0x3bf   : > { %v2768_v58 = vadd.f32 -1.0, %v2937_v57  ;;  %2938 = vpow2.f32 %v2072_v56 }
 0x3c0   : > { %v2106_v19 = vmul.f32 1.6732632, %v2774_v10  ;;  %2940 = vpow2.f32 %v2060_v38 }
 0x3c1   : > { %v2100_v0 = vmul.f32 1.6732632, %v2768_v58 }
 0x3c2   : > { %v2122_v59 = vsel %vm2042_vm5, %v2020_v18, %v2106_v19 }
 0x3c3   : > { %v3989_v32 = vmul.f32 1.050701, %v2122_v59  ;;  %v2116_v23 = vsel %vm2036_vm8, %v2005_v26, %v2100_v0 }
 0x3c4   : > { %v2132_v50 = vmul.f32 1.050701, %v2116_v23  ;;  %v3991_v39 = vpop.f32.mrf.mxu3 }
 0x3c5   : > { %v2939_v46 = vpop.eup %2938  ;;  %v2154_v17 = vpack.c.bf16 %v3989_v32, %v3989_v32  ;;  %v2074_v60 = vmul.f32 1.442695, %v3991_v39  ;;  %v3996_v41 = vpop.f32.mrf.mxu1  ;;  %vm2044_vm15 = vcmp.gt.f32.partialorder %v3991_v39, 0.0 }
 0x3c6   : > { %v2941_v44 = vpop.eup %2940  ;;  %v2148_v16 = vpack.c.bf16 %v2132_v50, %v2132_v50  ;;  %v2177_v15 = vmax.f32 %v3957_v20, %v2132_v50  ;;  %v2775_v30 = vadd.f32 -1.0, %v2939_v46  ;;  %v2062_v47 = vmul.f32 1.442695, %v3996_v41 }
 0x3c7   : > { %2171 = vst.msk [vmem:[%s3925_s23 + $0x30] sm:$0xf] %vm2158_vm6, %v2154_v17  ;;  %v2769_v1 = vadd.f32 -1.0, %v2941_v44  ;;  %2942 = vpow2.f32 %v2074_v60  ;;  %vm2038_vm0 = vcmp.gt.f32.partialorder %v3996_v41, 0.0 }
 0x3c8   : > { %2165 = vst.msk [vmem:[%s3925_s23 + $0x18] sm:$0xf] %vm2158_vm6, %v2148_v16  ;;  %v2197_v9 = vrot.slane %v2177_v15, 2  ;;  %v2198_v7 = vrot.slane %v2177_v15, 4  ;;  %v2199_v62 = vrot.slane %v2177_v15, 6  ;;  %v2786_v8 = vrot.slane %v2177_v15, 9 }
 0x3c9   : > { %v2107_v2 = vmul.f32 1.6732632, %v2775_v30  ;;  %v2101_v54 = vmul.f32 1.6732632, %v2769_v1  ;;  %2944 = vpow2.f32 %v2062_v47 }
 0x3ca   : > { %v2787_v3 = vrot.slane %v2197_v9, 9  ;;  %v2788_v53 = vrot.slane %v2198_v7, 9  ;;  %v2789_v11 = vrot.slane %v2199_v62, 9  ;;  %v2343_v20 = vmax.f32 %v2177_v15, %v2786_v8 }
 0x3cb   : > { %v2123_v13 = vsel %vm2043_vm11, %v2022_v4, %v2107_v2  ;;  %v2117_v49 = vsel %vm2037_vm1, %v2007_v63, %v2101_v54 }
 0x3cc   : > { %v2344_v28 = vmax.f32 %v2197_v9, %v2787_v3  ;;  %v2345_v61 = vmax.f32 %v2198_v7, %v2788_v53  ;;  %v2346_v45 = vmax.f32 %v2199_v62, %v2789_v11  ;;  %v4005_v33 = vmul.f32 1.050701, %v2123_v13  ;;  %v4014_v24 = vpop.f32.mrf.mxu3 }
 0x3cd   : > { %v2943_v21 = vpop.eup %2942  ;;  %v2133_v40 = vmul.f32 1.050701, %v2117_v49  ;;  %v2375_v35 = vpack.c.bf16 %v2343_v20, %v2343_v20  ;;  %v2076_v59 = vmul.f32 1.442695, %v4014_v24  ;;  %v4021_v60 = vpop.f32.mrf.mxu1  ;;  %vm2045_vm2 = vcmp.gt.f32.partialorder %v4014_v24, 0.0 }
 0x3ce   : > { %v2376_v51 = vpack.c.bf16 %v2344_v28, %v2344_v28  ;;  %v2377_v29 = vpack.c.bf16 %v2345_v61, %v2345_v61  ;;  %v2378_v12 = vpack.c.bf16 %v2346_v45, %v2346_v45  ;;  %v2155_v34 = vpack.c.bf16 %v4005_v33, %v4005_v33 }
 0x3cf   : > { %v2945_v6 = vpop.eup %2944  ;;  %v2149_v5 = vpack.c.bf16 %v2133_v40, %v2133_v40  ;;  %v2178_v48 = vmax.f32 %v3971_v27, %v2133_v40  ;;  %v2776_v37 = vadd.f32 -1.0, %v2943_v21  ;;  %v2439_v4 = vunpack.c.l.b16 %v2375_v35 }
 0x3d0   : > { %v2440_v31 = vunpack.c.l.b16 %v2376_v51  ;;  %v2441_v43 = vunpack.c.l.b16 %v2377_v29  ;;  %v2442_v14 = vunpack.c.l.b16 %v2378_v12  ;;  %v2770_v36 = vadd.f32 -1.0, %v2945_v6  ;;  %2172 = vst.msk [vmem:[%s3925_s23 + $0x34] sm:$0xf] %vm2158_vm6, %v2155_v34 }
 0x3d1   : > { %v2200_v18 = vrot.slane %v2178_v48, 2  ;;  %v2201_v52 = vrot.slane %v2178_v48, 4  ;;  %v2202_v22 = vrot.slane %v2178_v48, 6  ;;  %v2790_v26 = vrot.slane %v2178_v48, 9  ;;  %2166 = vst.msk [vmem:[%s3925_s23 + $0x1c] sm:$0xf] %vm2158_vm6, %v2149_v5 }
 0x3d2   : > { %v2484_v55 = vrot.slane %v2440_v31, 7  ;;  %v2486_v56 = vrot.slane %v2441_v43, 6  ;;  %v2488_v63 = vrot.slane %v2442_v14, 5  ;;  %v2108_v19 = vmul.f32 1.6732632, %v2776_v37 }
 0x3d3   : > { %v2791_v27 = vrot.slane %v2200_v18, 9  ;;  %v2792_v57 = vrot.slane %v2201_v52, 9  ;;  %v2793_v10 = vrot.slane %v2202_v22, 9  ;;  %v2347_v38 = vmax.f32 %v2178_v48, %v2790_v26 }
 0x3d4   : > { %v2485_v58 = vsel %vm2464_vm3, %v2484_v55, %v2439_v4  ;;  %v2102_v0 = vmul.f32 1.6732632, %v2770_v36  ;;  %v2124_v15 = vsel %vm2044_vm15, %v3991_v39, %v2108_v19  ;;  %2946 = vpow2.f32 %v2076_v59 }
 0x3d5   : > { %v2487_v23 = vsel %vm2467_vm7, %v2486_v56, %v2485_v58  ;;  %v2348_v50 = vmax.f32 %v2200_v18, %v2791_v27  ;;  %v2349_v46 = vmax.f32 %v2201_v52, %v2792_v57  ;;  %v2350_v17 = vmax.f32 %v2202_v22, %v2793_v10 }
 0x3d6   : > { %v2489_v44 = vsel %vm2470_vm9, %v2488_v63, %v2487_v23  ;;  %v2379_v16 = vpack.c.bf16 %v2347_v38, %v2347_v38  ;;  %v2118_v30 = vsel %vm2038_vm0, %v3996_v41, %v2102_v0  ;;  %v2140_v7 = vmul.f32 1.050701, %v2124_v15 }
 0x3d7   : > { %v2380_v1 = vpack.c.bf16 %v2348_v50, %v2348_v50  ;;  %v2381_v47 = vpack.c.bf16 %v2349_v46, %v2349_v46  ;;  %v2382_v9 = vpack.c.bf16 %v2350_v17, %v2350_v17  ;;  %v2134_v8 = vmul.f32 1.050701, %v2118_v30 }
 0x3d8   : > { %v2443_v62 = vunpack.c.l.b16 %v2379_v16  ;;  %v2064_v2 = vmul.f32 1.442695, %v4021_v60  ;;  %v2156_v11 = vpack.c.bf16 %v2140_v7, %v2140_v7  ;;  %v2181_v20 = vmax.f32 %v3989_v32, %v2140_v7 }
 0x3d9   : > { %v2444_v54 = vunpack.c.l.b16 %v2380_v1  ;;  %v2445_v3 = vunpack.c.l.b16 %v2381_v47  ;;  %v2446_v53 = vunpack.c.l.b16 %v2382_v9  ;;  %v2150_v13 = vpack.c.bf16 %v2134_v8, %v2134_v8 }
 0x3da   : > { %v2490_v39 = vrot.slane %v2443_v62, 4  ;;  %v2179_v41 = vmax.f32 %v2134_v8, %v3977_v25  ;;  %2173 = vst.msk [vmem:[%s3925_s23 + $0x38] sm:$0xf] %vm2158_vm6, %v2156_v11  ;;  %2948 = vpow2.f32 %v2064_v2  ;;  %v2209_v21 = vrot.slane %v2181_v20, 2  ;;  %v2947_v25 = vpop.eup %2946 }
 0x3db   : > { %v2492_v49 = vrot.slane %v2444_v54, 3  ;;  %v2494_v28 = vrot.slane %v2445_v3, 2  ;;  %v2496_v61 = vrot.slane %v2446_v53, 1  ;;  %v2210_v40 = vrot.slane %v2181_v20, 4  ;;  %2167 = vst.msk [vmem:[%s3925_s23 + $0x20] sm:$0xf] %vm2158_vm6, %v2150_v13 }
 0x3dc   : > { %v2491_v45 = vsel %vm2473_vm10, %v2490_v39, %v2489_v44  ;;  %v2211_v35 = vrot.slane %v2181_v20, 6  ;;  %v2802_v29 = vrot.slane %v2181_v20, 9  ;;  %v2203_v32 = vrot.slane %v2179_v41, 2 }
 0x3dd   : > { %v2493_v51 = vsel %vm2476_vm12, %v2492_v49, %v2491_v45  ;;  %v2204_v12 = vrot.slane %v2179_v41, 4  ;;  %v2803_v34 = vrot.slane %v2209_v21, 9  ;;  %v2804_v5 = vrot.slane %v2210_v40, 9 }
 0x3de   : > { %v2495_v6 = vsel %vm2479_vm13, %v2494_v28, %v2493_v51  ;;  %v2805_v48 = vrot.slane %v2211_v35, 9  ;;  %v2359_v31 = vmax.f32 %v2181_v20, %v2802_v29  ;;  %v2205_v43 = vrot.slane %v2179_v41, 6 }
 0x3df   : > { %v2497_v37 = vsel %vm2482_vm14, %v2496_v61, %v2495_v6  ;;  %v2794_v14 = vrot.slane %v2179_v41, 9  ;;  %v2360_v18 = vmax.f32 %v2209_v21, %v2803_v34  ;;  %v2361_v52 = vmax.f32 %v2210_v40, %v2804_v5 }
 0x3e0   : > { %v2527_v36 = vpack.c.b16 %v2497_v37, %v2497_v37  ;;  %v2949_v22 = vpop.eup %2948  ;;  %v2795_v26 = vrot.slane %v2203_v32, 9  ;;  %v2796_v4 = vrot.slane %v2204_v12, 9  ;;  %v2362_v55 = vmax.f32 %v2211_v35, %v2805_v48 }
 0x3e1   : > { %v2392_v56 = vpack.c.bf16 %v2360_v18, %v2360_v18  ;;  %v2393_v63 = vpack.c.bf16 %v2361_v52, %v2361_v52  ;;  %v2797_v27 = vrot.slane %v2205_v43, 9  ;;  %v2391_v57 = vpack.c.bf16 %v2359_v31, %v2359_v31 }
 0x3e2   : > { %2535 = vst.msk [vmem:[%s3962_s29 + $0x4] sm:$0xf] %vm2158_vm6, %v2527_v36  ;;  %v2351_v10 = vmax.f32 %v2179_v41, %v2794_v14  ;;  %v2352_v38 = vmax.f32 %v2203_v32, %v2795_v26  ;;  %v2353_v58 = vmax.f32 %v2204_v12, %v2796_v4  ;;  %v2777_v50 = vadd.f32 -1.0, %v2947_v25 }
 0x3e3   : > { %v2456_v19 = vunpack.c.l.b16 %v2392_v56  ;;  %v2457_v0 = vunpack.c.l.b16 %v2393_v63  ;;  %v2394_v46 = vpack.c.bf16 %v2362_v55, %v2362_v55  ;;  %v2354_v44 = vmax.f32 %v2205_v43, %v2797_v27 }
 0x3e4   : > { %v2384_v59 = vpack.c.bf16 %v2352_v38, %v2352_v38  ;;  %v2385_v23 = vpack.c.bf16 %v2353_v58, %v2353_v58  ;;  %v2455_v16 = vunpack.c.l.b16 %v2391_v57  ;;  %v2383_v15 = vpack.c.bf16 %v2351_v10, %v2351_v10 }
 0x3e5   : > { %v2512_v17 = vrot.slane %v2456_v19, 7  ;;  %v2109_v1 = vmul.f32 1.6732632, %v2777_v50  ;;  %v2514_v47 = vrot.slane %v2457_v0, 6  ;;  %v2771_v7 = vadd.f32 -1.0, %v2949_v22 }
 0x3e6   : > { %v2448_v30 = vunpack.c.l.b16 %v2384_v59  ;;  %v2449_v9 = vunpack.c.l.b16 %v2385_v23  ;;  %v2458_v2 = vunpack.c.l.b16 %v2394_v46  ;;  %v2386_v54 = vpack.c.bf16 %v2354_v44, %v2354_v44 }
 0x3e7   : > { %v2513_v62 = vsel %vm2464_vm3, %v2512_v17, %v2455_v16  ;;  %v2125_v3 = vsel %vm2045_vm2, %v4014_v24, %v2109_v1  ;;  %v2103_v53 = vmul.f32 1.6732632, %v2771_v7  ;;  %v2447_v11 = vunpack.c.l.b16 %v2383_v15 }
 0x3e8   : > { %v2498_v8 = vrot.slane %v2448_v30, 7  ;;  %v2141_v39 = vmul.f32 1.050701, %v2125_v3  ;;  %vm2039_vm4 = vcmp.gt.f32.partialorder %v4021_v60, 0.0  ;;  %v2515_v20 = vsel %vm2467_vm7, %v2514_v47, %v2513_v62 }
 0x3e9   : > { %v2500_v13 = vrot.slane %v2449_v9, 6  ;;  %v2119_v41 = vsel %vm2039_vm4, %v4021_v60, %v2103_v53  ;;  %v2516_v21 = vrot.slane %v2458_v2, 5  ;;  %v2450_v40 = vunpack.c.l.b16 %v2386_v54 }
 0x3ea   : > { %v2499_v49 = vsel %vm2464_vm3, %v2498_v8, %v2447_v11  ;;  %v2157_v28 = vpack.c.bf16 %v2141_v39, %v2141_v39  ;;  %v2182_v61 = vmax.f32 %v4005_v33, %v2141_v39  ;;  %v2135_v45 = vmul.f32 1.050701, %v2119_v41 }
 0x3eb   : > { %v2501_v32 = vsel %vm2467_vm7, %v2500_v13, %v2499_v49  ;;  %v2517_v12 = vsel %vm2470_vm9, %v2516_v21, %v2515_v20  ;;  %v2502_v16 = vrot.slane %v2450_v40, 5 }
 0x3ec   : > { %2174 = vst.msk [vmem:[%s3925_s23 + $0x3c] sm:$0xf] %vm2158_vm6, %v2157_v28  ;;  %v2212_v24 = vrot.slane %v2182_v61, 2  ;;  %v2213_v35 = vrot.slane %v2182_v61, 4  ;;  %v2214_v51 = vrot.slane %v2182_v61, 6  ;;  %v2806_v29 = vrot.slane %v2182_v61, 9 }
 0x3ed   : > { %v2151_v60 = vpack.c.bf16 %v2135_v45, %v2135_v45  ;;  %v2180_v25 = vmax.f32 %v2135_v45, %v3983_v42  ;;  %v2503_v54 = vsel %vm2470_vm9, %v2502_v16, %v2501_v32 }
 0x3ee   : > { %v2807_v6 = vrot.slane %v2212_v24, 9  ;;  %v2808_v34 = vrot.slane %v2213_v35, 9  ;;  %v2809_v33 = vrot.slane %v2214_v51, 9  ;;  %v2363_v5 = vmax.f32 %v2182_v61, %v2806_v29 }
 0x3ef   : > { %2168 = vst.msk [vmem:[%s3925_s23 + $0x24] sm:$0xf] %vm2158_vm6, %v2151_v60  ;;  %v2206_v48 = vrot.slane %v2180_v25, 2  ;;  %v2207_v37 = vrot.slane %v2180_v25, 4  ;;  %v2208_v31 = vrot.slane %v2180_v25, 6  ;;  %v2798_v43 = vrot.slane %v2180_v25, 9 }
 0x3f0   : > { %v2364_v14 = vmax.f32 %v2212_v24, %v2807_v6  ;;  %v2365_v36 = vmax.f32 %v2213_v35, %v2808_v34  ;;  %v2366_v18 = vmax.f32 %v2214_v51, %v2809_v33  ;;  %v2395_v52 = vpack.c.bf16 %v2363_v5, %v2363_v5 }
 0x3f1   : > { %v2799_v22 = vrot.slane %v2206_v48, 9  ;;  %v2800_v26 = vrot.slane %v2207_v37, 9  ;;  %v2801_v4 = vrot.slane %v2208_v31, 9  ;;  %v2355_v55 = vmax.f32 %v2180_v25, %v2798_v43 }
 0x3f2   : > { %v2396_v56 = vpack.c.bf16 %v2364_v14, %v2364_v14  ;;  %v2397_v42 = vpack.c.bf16 %v2365_v36, %v2365_v36  ;;  %v2398_v63 = vpack.c.bf16 %v2366_v18, %v2366_v18  ;;  %v2459_v27 = vunpack.c.l.b16 %v2395_v52 }
 0x3f3   : > { %v2356_v57 = vmax.f32 %v2206_v48, %v2799_v22  ;;  %v2357_v10 = vmax.f32 %v2207_v37, %v2800_v26  ;;  %v2358_v38 = vmax.f32 %v2208_v31, %v2801_v4  ;;  %v2387_v58 = vpack.c.bf16 %v2355_v55, %v2355_v55 }
 0x3f4   : > { %v2460_v19 = vunpack.c.l.b16 %v2396_v56  ;;  %v2461_v0 = vunpack.c.l.b16 %v2397_v42  ;;  %v2462_v59 = vunpack.c.l.b16 %v2398_v63  ;;  %v2518_v23 = vrot.slane %v2459_v27, 4 }
 0x3f5   : > { %v2388_v50 = vpack.c.bf16 %v2356_v57, %v2356_v57  ;;  %v2389_v46 = vpack.c.bf16 %v2357_v10, %v2357_v10  ;;  %v2390_v17 = vpack.c.bf16 %v2358_v38, %v2358_v38  ;;  %v2451_v44 = vunpack.c.l.b16 %v2387_v58 }
 0x3f6   : > { %v2519_v15 = vsel %vm2473_vm10, %v2518_v23, %v2517_v12  ;;  %v2520_v30 = vrot.slane %v2460_v19, 3  ;;  %v2522_v1 = vrot.slane %v2461_v0, 2  ;;  %v2524_v2 = vrot.slane %v2462_v59, 1 }
 0x3f7   : > { %v2452_v47 = vunpack.c.l.b16 %v2388_v50  ;;  %v2453_v9 = vunpack.c.l.b16 %v2389_v46  ;;  %v2454_v7 = vunpack.c.l.b16 %v2390_v17  ;;  %v2504_v62 = vrot.slane %v2451_v44, 4 }
 0x3f8   : > { %v2521_v8 = vsel %vm2476_vm12, %v2520_v30, %v2519_v15 }
 0x3f9   : > { %v2523_v3 = vsel %vm2479_vm13, %v2522_v1, %v2521_v8  ;;  %v2505_v53 = vsel %vm2473_vm10, %v2504_v62, %v2503_v54  ;;  %v2506_v11 = vrot.slane %v2452_v47, 3  ;;  %v2508_v39 = vrot.slane %v2453_v9, 2 }
 0x3fa   : > { %v2525_v20 = vsel %vm2482_vm14, %v2524_v2, %v2523_v3  ;;  %v2510_v49 = vrot.slane %v2454_v7, 1 }
 0x3fb   : > { %v2529_v13 = vpack.c.b16 %v2525_v20, %v2525_v20  ;;  %v2507_v41 = vsel %vm2476_vm12, %v2506_v11, %v2505_v53 }
 0x3fc   : > { %v2509_v28 = vsel %vm2479_vm13, %v2508_v39, %v2507_v41 }
 0x3fd   : > { %2537 = vst.msk [vmem:[%s3962_s29 + $0xc] sm:$0xf] %vm2158_vm6, %v2529_v13  ;;  %v2511_v61 = vsel %vm2482_vm14, %v2510_v49, %v2509_v28 }
 0x3fe   : > { %v2528_v45 = vpack.c.b16 %v2511_v61, %v2511_v61 }
 0x400   : > { %2536 = vst.msk [vmem:[%s3962_s29 + $0x8] sm:$0xf] %vm2158_vm6, %v2528_v45 }
 0x401 PF: > { %s15_s19 = sadd.s32 1, %s2988_s19   ;;  %s4098_s15 = smov %s2980_s17 }
 0x402   : > { %p12_p12 = scmp.ge.s32.totalorder %s15_s19, 8   ;;  %s4099_s16 = smov %s2984_s18 }
 0x403   : > { %s4100_s17 = smov %s4103_s20  ;;  %s4101_s18 = smov %s4107_s21 }
 0x404   :  { %14 = sbr.rel (!%p12_p12) target bundleno = 3 (0x3), region = 75 }

</bundles_post_ra>
